<compile_context>
chip_gen: v7x
topology: tpu7x:2x2x1
jax: 0.10.0
libtpu: 0.0.40
codegen_flags: <defaults>
</compile_context>

<pallas_src>
import functools

import numpy as np
import jax
import jax.numpy as jnp
from jax import lax
from jax.experimental import pallas as pl
from jax.experimental.pallas import tpu as pltpu


# ---------------------------------------------------------------------------
# Host-side builders (numpy, run once).
#
# Activation layout inside the kernel (lane-dense, 128 lanes at these shapes):
#     R[h, (n*W + w)*C + c] = A[n, h, w, c]
# Up-conv outputs are kept "row-stacked": all even output rows first, then all
# odd output rows; consumers (and the wrapper's final reshape) account for it,
# so no in-kernel row interleave is ever needed.
# ---------------------------------------------------------------------------
def _down_tstack(Hin):
    """Folded vertical taps for Conv2d k4 s2 p1: (4*OH, Hin) 0/1 matrix."""
    OH = Hin // 2
    T = np.zeros((4 * OH, Hin), np.float32)
    for kh in range(4):
        for oh in range(OH):
            ih = 2 * oh + kh - 1
            if 0 <= ih < Hin:
                T[kh * OH + oh, ih] = 1.0
    return T


def _down_wcat(w, Win, N):
    """Folded banded weights for Conv2d k4 s2 p1 (block-diag over samples).

    w: PyTorch layout (Cout, Cin, 4, 4).  Returns (4*N*Win*Cin, N*(Win//2)*Cout).
    Row index = kh*Lin + (n*Win + iw)*Cin + cin, matching the kernel's
    lane-concat of the four tapped tiles."""
    Cout, Cin, _, _ = w.shape
    Wout = Win // 2
    Lin = N * Win * Cin
    Lout = N * Wout * Cout
    Wc = np.zeros((4 * Lin, Lout), np.float32)
    for kh in range(4):
        for n in range(N):
            for ow in range(Wout):
                for kw in range(4):
                    iw = 2 * ow + kw - 1
                    if 0 <= iw < Win:
                        r0 = kh * Lin + (n * Win + iw) * Cin
                        c0 = (n * Wout + ow) * Cout
                        Wc[r0:r0 + Cin, c0:c0 + Cout] = w[:, :, kh, kw].T
    return Wc


def _up_sstack(H, stacked_src):
    """Folded row gathers for ConvTranspose2d sources: (3*H, H) 0/1 matrix.

    Row blocks give [true rows g | true rows g-1 | true rows g+1] (zero rows
    when out of range).  `stacked_src` handles sources stored in the
    even-rows-then-odd-rows ("stacked") order produced by up_conv."""
    def sidx(g):
        if not stacked_src:
            return g
        return g // 2 if g % 2 == 0 else H // 2 + g // 2

    S = np.zeros((3 * H, H), np.float32)
    for g in range(H):
        S[g, sidx(g)] = 1.0
        if g - 1 >= 0:
            S[H + g, sidx(g - 1)] = 1.0
        if g + 1 < H:
            S[2 * H + g, sidx(g + 1)] = 1.0
    return S


def _up_banded(w, Win, N):
    """Per-kh banded matrices for ConvTranspose2d k4 s2 p1 (block-diag over n).

    w: PyTorch layout (Cin, Cout, 4, 4).  Returns (4, N*Win*Cin, N*2*Win*Cout)."""
    Cin, Cout, _, _ = w.shape
    Wout = 2 * Win
    U = np.zeros((4, N * Win * Cin, N * Wout * Cout), np.float32)
    for kh in range(4):
        for n in range(N):
            for iw in range(Win):
                for kw in range(4):
                    ow = 2 * iw + kw - 1
                    if 0 <= ow < Wout:
                        r0 = (n * Win + iw) * Cin
                        c0 = (n * Wout + ow) * Cout
                        U[kh, r0:r0 + Cin, c0:c0 + Cout] = w[:, :, kh, kw]
    return U


def _up_weo(w_list, Win, N):
    """Single folded ConvT weight matrix (K, 2*Lout); columns = [even | odd].

    Row blocks match the kernel's z layout: identity gathers of every source,
    then all the (g-1) gathers, then all the (g+1) gathers:
      even out row m = sum_s  X_s[m] @ U_s[1] + X_s[m-1] @ U_s[3]
      odd  out row m = sum_s  X_s[m] @ U_s[2] + X_s[m+1] @ U_s[0]
    """
    Us = [_up_banded(np.asarray(w, np.float32), Win, N) for w in w_list]
    id_b = [np.concatenate([U[1], U[2]], axis=1) for U in Us]
    dn_b = [np.concatenate([U[3], np.zeros_like(U[3])], axis=1) for U in Us]
    up_b = [np.concatenate([np.zeros_like(U[0]), U[0]], axis=1) for U in Us]
    return np.concatenate(id_b + dn_b + up_b, axis=0)


def _bn_lane_mats(NW, C):
    """rs (NW*C, C) sums the (n,w,c) lane layout over (n,w); bc = rs.T."""
    R = np.zeros((NW * C, C), np.float32)
    for i in range(NW):
        for c in range(C):
            R[i * C + c, c] = 1.0
    return R, np.ascontiguousarray(R.T)


# ---------------------------------------------------------------------------
# The fused megakernel
# ---------------------------------------------------------------------------
def _part_unet2_kernel(
    x0_ref,
    t1_ref, w1_ref,
    t2_ref, w2_ref, g2_ref, b2_ref,
    t3_ref, w3_ref,
    s4_ref, w4_ref, g4_ref, b4_ref,
    s5a_ref, s5b_ref, w5_ref, g5_ref, b5_ref,
    s6a_ref, s6b_ref, w6_ref, bias6_ref,
    rs16_ref, bc16_ref, rs8_ref, bc8_ref,
    out_ref,
    *, cnt_d1, cnt_u2, cnt_u1, eps,
):
    f32 = jnp.float32
    bf16 = jnp.bfloat16

    def dot(a, b):
        return jnp.dot(a, b, preferred_element_type=f32)

    lrelu = lambda v: jnp.where(v > 0, v, 0.2 * v)
    relu = lambda v: jnp.maximum(v, 0.0)

    def down_conv(x, t_ref, w_ref):
        # Conv2d k4 s2 p1: one folded 4-tap row gather + one wide-K matmul.
        xb = x.astype(bf16)
        g = dot(t_ref[...], xb).astype(bf16)                    # (4*OH, Lin)
        oh = g.shape[0] // 4
        gcat = jnp.concatenate(
            [g[0 * oh:1 * oh], g[1 * oh:2 * oh],
             g[2 * oh:3 * oh], g[3 * oh:4 * oh]], axis=1)       # (OH, 4*Lin)
        return dot(gcat, w_ref[...])                            # (OH, Lout) f32

    def up_conv(sources, s_refs, w_ref):
        # ConvTranspose2d k4 s2 p1 (sub-pixel): one folded gather matmul per
        # source, one wide matmul producing [even rows | odd rows] lane halves.
        # Output rows stay "stacked" (even block then odd block).
        h = sources[0].shape[0]
        parts = [dot(s_ref[...], x.astype(bf16)).astype(bf16)
                 for x, s_ref in zip(sources, s_refs)]          # each (3*h, L_s)
        z = jnp.concatenate(
            [p[0 * h:1 * h] for p in parts]
            + [p[1 * h:2 * h] for p in parts]
            + [p[2 * h:3 * h] for p in parts], axis=1)          # (h, 3*sum L_s)
        eo = dot(z, w_ref[...])                                 # (h, 2*Lout) f32
        lout = eo.shape[1] // 2
        return jnp.concatenate([eo[:, :lout], eo[:, lout:]], axis=0)  # (2h, Lout)

    def batchnorm(y, g_ref, b_ref, rs_ref, bc_ref, cnt):
        # Training-mode batch statistics, all in f32.  E[y^2]-mean^2 form so the
        # two row-sums are independent; one fused lane-aggregation matmul and
        # one fused broadcast matmul per BN.
        s1 = jnp.sum(y, axis=0, keepdims=True)                  # (1, L)
        s2 = jnp.sum(y * y, axis=0, keepdims=True)              # (1, L)
        agg = dot(jnp.concatenate([s1, s2], axis=0), rs_ref[...]) * (1.0 / cnt)
        mean = agg[0:1]                                         # (1, C)
        var = agg[1:2] - mean * mean
        scale = g_ref[...] * lax.rsqrt(var + eps)
        shift = b_ref[...] - mean * scale
        ssb = dot(jnp.concatenate([scale, shift], axis=0), bc_ref[...])  # (2, L)
        return y * ssb[0:1] + ssb[1:2]

    x0 = x0_ref[...]                                            # (16, N*16*in_nc)

    # ---- down path ----
    d0 = down_conv(x0, t1_ref, w1_ref)                          # (8, 128)
    d1 = down_conv(lrelu(d0), t2_ref, w2_ref)                   # (4, 128)
    d1 = batchnorm(d1, g2_ref, b2_ref, rs16_ref, bc16_ref, cnt_d1)
    d2 = down_conv(lrelu(d1), t3_ref, w3_ref)                   # (2, 64)

    # ---- innermost up ----
    u2 = up_conv([relu(d2)], [s4_ref], w4_ref)                  # (4, 128) stacked
    u2 = batchnorm(u2, g4_ref, b4_ref, rs16_ref, bc16_ref, cnt_u2)

    # ---- middle up: consumes cat(d1, u2) via per-source weight blocks ----
    u1 = up_conv([relu(d1), relu(u2)], [s5a_ref, s5b_ref], w5_ref)  # (8, 128)
    u1 = batchnorm(u1, g5_ref, b5_ref, rs8_ref, bc8_ref, cnt_u1)

    # ---- outermost up: consumes cat(d0, u1), + bias, Tanh ----
    y = up_conv([relu(d0), relu(u1)], [s6a_ref, s6b_ref], w6_ref)   # (16, 128)
    out_ref[...] = jnp.tanh(y + bias6_ref[...])


# ---------------------------------------------------------------------------
# Wrapper: parameter preprocessing (once, host side) + jitted forward
# ---------------------------------------------------------------------------
def preprocess_params(params, *, batch, spatial, input_nc, output_nc, ngf):
    P = {k: np.asarray(v, np.float32) for k, v in params.items()}
    N = batch
    H0, H1, H2, H3 = spatial, spatial // 2, spatial // 4, spatial // 8
    C1, C2 = ngf, ngf * 2
    bf16, f32 = jnp.bfloat16, jnp.float32

    consts = []
    def add(arr, dt):
        consts.append(jnp.asarray(np.asarray(arr, np.float32), dtype=dt))

    # outermost down: Conv2d(input_nc -> ngf)
    add(_down_tstack(H0), bf16)
    add(_down_wcat(P["o_down_w"], H0, N), bf16)
    # middle down: LeakyReLU -> Conv2d(ngf -> 2ngf) -> BN
    add(_down_tstack(H1), bf16)
    add(_down_wcat(P["m_down_w"], H1, N), bf16)
    add(P["m_dn_g"].reshape(1, C2), f32)
    add(P["m_dn_b"].reshape(1, C2), f32)
    # innermost down: LeakyReLU -> Conv2d(2ngf -> 2ngf)
    add(_down_tstack(H2), bf16)
    add(_down_wcat(P["i_down_w"], H2, N), bf16)
    # innermost up: ReLU -> ConvT(2ngf -> 2ngf) -> BN
    add(_up_sstack(H3, stacked_src=False), bf16)
    add(_up_weo([P["i_up_w"]], H3, N), bf16)
    add(P["i_un_g"].reshape(1, C2), f32)
    add(P["i_un_b"].reshape(1, C2), f32)
    # middle up: ReLU -> ConvT(cat(d1,u2): 4ngf -> ngf) -> BN   (split weights)
    add(_up_sstack(H2, stacked_src=False), bf16)   # source d1 (true row order)
    add(_up_sstack(H2, stacked_src=True), bf16)    # source u2 (stacked order)
    add(_up_weo([P["m_up_w"][:C2], P["m_up_w"][C2:]], H2, N), bf16)
    add(P["m_un_g"].reshape(1, C1), f32)
    add(P["m_un_b"].reshape(1, C1), f32)
    # outermost up: ReLU -> ConvT(cat(d0,u1): 2ngf -> out_nc) + bias -> Tanh
    add(_up_sstack(H1, stacked_src=False), bf16)   # source d0
    add(_up_sstack(H1, stacked_src=True), bf16)    # source u1
    add(_up_weo([P["o_up_w"][:C1], P["o_up_w"][C1:]], H1, N), bf16)
    add(np.tile(P["o_up_b"], N * H0).reshape(1, N * H0 * output_nc), f32)
    # BN lane-aggregation helpers (per distinct (N*W, C) of normalized tensors)
    rs16, bc16 = _bn_lane_mats(N * H2, C2)   # d1 / u2: W=H2, C=2ngf
    rs8, bc8 = _bn_lane_mats(N * H1, C1)     # u1:      W=H1, C=ngf
    add(rs16, f32); add(bc16, f32); add(rs8, f32); add(bc8, f32)
    return tuple(consts)


def part_unet2_forward(x_nchw, consts, *, batch, spatial, input_nc, output_nc):
    N, S = batch, spatial
    # NCHW -> (h, (n, w, c)) lane-dense layout (128 lanes at these shapes).
    x0 = jnp.transpose(x_nchw.astype(jnp.float32), (2, 0, 3, 1))
    x0 = x0.reshape(S, N * S * input_nc)

    H1, H2 = S // 2, S // 4
    kernel = functools.partial(
        _part_unet2_kernel,
        cnt_d1=float(N * H2 * H2),
        cnt_u2=float(N * H2 * H2),
        cnt_u1=float(N * H1 * H1),
        eps=1e-5,
    )

    vmem = pl.BlockSpec(memory_space=pltpu.MemorySpace.VMEM)
    out = pl.pallas_call(
        kernel,
        out_shape=jax.ShapeDtypeStruct((S, N * S * output_nc), jnp.float32),
        in_specs=[vmem] * (1 + len(consts)),
        out_specs=vmem,
    )(x0, *consts)

    # Kernel output rows are "stacked": [even true rows | odd true rows];
    # lanes are (n, w, c).  The wrapper reshape/transpose absorbs both.
    y = out.reshape(2, S // 2, N, S, output_nc)        # (parity, m, n, w, c)
    y = jnp.transpose(y, (2, 4, 1, 0, 3))              # (n, c, m, parity, w)
    return y.reshape(N, output_nc, S, S)               # h = 2*m + parity


# ---------------------------------------------------------------------------
# Parameters (PartUnet2 with num_downs=3) in PyTorch layouts
# ---------------------------------------------------------------------------
def init_params(key, input_nc, output_nc, ngf):
    ks = jax.random.split(key, 8)
    n = lambda k, shape: (0.02 * jax.random.normal(k, shape)).astype(jnp.float32)
    return {
        "o_down_w": n(ks[0], (ngf, input_nc, 4, 4)),           # Conv2d, bias=False
        "o_up_w": n(ks[1], (ngf * 2, output_nc, 4, 4)),        # ConvT, bias=True
        "o_up_b": n(ks[2], (output_nc,)),
        "m_down_w": n(ks[3], (ngf * 2, ngf, 4, 4)),            # Conv2d, bias=False
        "m_dn_g": jnp.ones((ngf * 2,), jnp.float32),
        "m_dn_b": jnp.zeros((ngf * 2,), jnp.float32),
        "m_up_w": n(ks[4], (ngf * 4, ngf, 4, 4)),              # ConvT, bias=False
        "m_un_g": jnp.ones((ngf,), jnp.float32),
        "m_un_b": jnp.zeros((ngf,), jnp.float32),
        "i_down_w": n(ks[5], (ngf * 2, ngf * 2, 4, 4)),        # Conv2d, bias=False
        "i_up_w": n(ks[6], (ngf * 2, ngf * 2, 4, 4)),          # ConvT, bias=False
        "i_un_g": jnp.ones((ngf * 2,), jnp.float32),
        "i_un_b": jnp.zeros((ngf * 2,), jnp.float32),
    }


# ---------------------------------------------------------------------------
# Pure-JAX reference (lax convs) for a correctness check
# ---------------------------------------------------------------------------
def _ref_conv(x, w, stride, pad):
    return lax.conv_general_dilated(
        x, jnp.transpose(w, (2, 3, 1, 0)),
        window_strides=(stride, stride), padding=((pad, pad), (pad, pad)),
        dimension_numbers=("NHWC", "HWIO", "NHWC"),
        precision=lax.Precision.HIGHEST)


def _ref_convT(x, w, stride, pad):
    w_conv = jnp.transpose(w[:, :, ::-1, ::-1], (1, 0, 2, 3))
    K = w.shape[2]
    return lax.conv_general_dilated(
        x, jnp.transpose(w_conv, (2, 3, 1, 0)),
        window_strides=(1, 1), padding=((K - 1 - pad, K - 1 - pad),) * 2,
        lhs_dilation=(stride, stride),
        dimension_numbers=("NHWC", "HWIO", "NHWC"),
        precision=lax.Precision.HIGHEST)


def _ref_bn(x, g, b, eps=1e-5):
    mean = jnp.mean(x, axis=(0, 1, 2), keepdims=True)
    var = jnp.mean((x - mean) ** 2, axis=(0, 1, 2), keepdims=True)
    return (x - mean) * jax.lax.rsqrt(var + eps) * g + b


def reference_forward(x_nchw, p):
    x = jnp.transpose(x_nchw, (0, 2, 3, 1))
    lrelu = lambda v: jnp.where(v > 0, v, 0.2 * v)
    relu = lambda v: jnp.maximum(v, 0.0)
    d0 = _ref_conv(x, p["o_down_w"], 2, 1)
    d1 = _ref_bn(_ref_conv(lrelu(d0), p["m_down_w"], 2, 1), p["m_dn_g"], p["m_dn_b"])
    d2 = _ref_conv(lrelu(d1), p["i_down_w"], 2, 1)
    u2 = _ref_bn(_ref_convT(relu(d2), p["i_up_w"], 2, 1), p["i_un_g"], p["i_un_b"])
    inner = jnp.concatenate([d1, u2], axis=-1)
    u1 = _ref_bn(_ref_convT(relu(inner), p["m_up_w"], 2, 1), p["m_un_g"], p["m_un_b"])
    mid = jnp.concatenate([d0, u1], axis=-1)
    out = jnp.tanh(_ref_convT(relu(mid), p["o_up_w"], 2, 1) + p["o_up_b"])
    return jnp.transpose(out, (0, 3, 1, 2))


# ---------------------------------------------------------------------------
if __name__ == "__main__":
    # PartUnet2(num_downs=3): spatial 16 -> 8 -> 4 -> 2.
    N, input_nc, output_nc, ngf, S = 2, 4, 4, 8, 16

    key = jax.random.PRNGKey(0)
    k_x, k_p = jax.random.split(key)
    x = jax.random.normal(k_x, (N, input_nc, S, S), dtype=jnp.float32)
    params = init_params(k_p, input_nc, output_nc, ngf)

    consts = preprocess_params(
        params, batch=N, spatial=S, input_nc=input_nc, output_nc=output_nc, ngf=ngf)

    fwd = jax.jit(functools.partial(
        part_unet2_forward, batch=N, spatial=S,
        input_nc=input_nc, output_nc=output_nc))
    y = fwd(x, consts)
    jax.block_until_ready(y)

    assert y.shape == (N, output_nc, S, S), y.shape
    assert bool(jnp.all(jnp.isfinite(y)))

    # Correctness vs. a pure-JAX (lax conv, f32 HIGHEST) reference of the same
    # module.  Tolerance accounts for bf16 matmul operands in the kernel.
    y_ref = reference_forward(x, params)
    err = float(jnp.max(jnp.abs(y - y_ref)))
    assert err < 3e-2, f"max abs error vs reference: {err}"

    print("KERNEL_OK")
</pallas_src>

<mosaic_0001>
module attributes {stable_mosaic.version = 11 : i64} {
  func.func @_part_unet2_kernel(%arg0: memref<16x128xf32, #tpu.memory_space<vmem>>, %arg1: memref<32x16xbf16, #tpu.memory_space<vmem>>, %arg2: memref<512x128xbf16, #tpu.memory_space<vmem>>, %arg3: memref<16x8xbf16, #tpu.memory_space<vmem>>, %arg4: memref<512x128xbf16, #tpu.memory_space<vmem>>, %arg5: memref<1x16xf32, #tpu.memory_space<vmem>>, %arg6: memref<1x16xf32, #tpu.memory_space<vmem>>, %arg7: memref<8x4xbf16, #tpu.memory_space<vmem>>, %arg8: memref<512x64xbf16, #tpu.memory_space<vmem>>, %arg9: memref<6x2xbf16, #tpu.memory_space<vmem>>, %arg10: memref<192x256xbf16, #tpu.memory_space<vmem>>, %arg11: memref<1x16xf32, #tpu.memory_space<vmem>>, %arg12: memref<1x16xf32, #tpu.memory_space<vmem>>, %arg13: memref<12x4xbf16, #tpu.memory_space<vmem>>, %arg14: memref<12x4xbf16, #tpu.memory_space<vmem>>, %arg15: memref<768x256xbf16, #tpu.memory_space<vmem>>, %arg16: memref<1x8xf32, #tpu.memory_space<vmem>>, %arg17: memref<1x8xf32, #tpu.memory_space<vmem>>, %arg18: memref<24x8xbf16, #tpu.memory_space<vmem>>, %arg19: memref<24x8xbf16, #tpu.memory_space<vmem>>, %arg20: memref<768x256xbf16, #tpu.memory_space<vmem>>, %arg21: memref<1x128xf32, #tpu.memory_space<vmem>>, %arg22: memref<128x16xf32, #tpu.memory_space<vmem>>, %arg23: memref<16x128xf32, #tpu.memory_space<vmem>>, %arg24: memref<128x8xf32, #tpu.memory_space<vmem>>, %arg25: memref<8x128xf32, #tpu.memory_space<vmem>>, %arg26: memref<16x128xf32, #tpu.memory_space<vmem>>) attributes {dimension_semantics = [], scalar_prefetch = 0 : i64, scratch_operands = 0 : i64, tpu.core_type = #tpu.core_type<tc>} {
    %c0 = arith.constant 0 : index
    %c0_0 = arith.constant 0 : index
    %0 = vector.load %arg0[%c0, %c0_0] : memref<16x128xf32, #tpu.memory_space<vmem>>, vector<16x128xf32>
    %1 = arith.truncf %0 : vector<16x128xf32> to vector<16x128xbf16>
    %c0_1 = arith.constant 0 : index
    %c0_2 = arith.constant 0 : index
    %2 = vector.load %arg1[%c0_1, %c0_2] : memref<32x16xbf16, #tpu.memory_space<vmem>>, vector<32x16xbf16>
    %cst = arith.constant dense<0.000000e+00> : vector<32x128xf32>
    %3 = tpu.matmul %2, %1, %cst {dimension_numbers = #tpu.dot_dimension_numbers<[1], [0], [0], [1], [0, 0, 1, 1], [], []>} : vector<32x16xbf16>, vector<16x128xbf16>, vector<32x128xf32> -> vector<32x128xf32>
    %4 = arith.truncf %3 : vector<32x128xf32> to vector<32x128xbf16>
    %5 = vector.extract_strided_slice %4 {offsets = [0, 0], sizes = [8, 128], strides = [1, 1]} : vector<32x128xbf16> to vector<8x128xbf16>
    %6 = vector.extract_strided_slice %4 {offsets = [8, 0], sizes = [8, 128], strides = [1, 1]} : vector<32x128xbf16> to vector<8x128xbf16>
    %7 = vector.extract_strided_slice %4 {offsets = [16, 0], sizes = [8, 128], strides = [1, 1]} : vector<32x128xbf16> to vector<8x128xbf16>
    %8 = vector.extract_strided_slice %4 {offsets = [24, 0], sizes = [8, 128], strides = [1, 1]} : vector<32x128xbf16> to vector<8x128xbf16>
    %9 = tpu.concatenate %5, %6, %7, %8 in 1 : vector<8x128xbf16>, vector<8x128xbf16>, vector<8x128xbf16>, vector<8x128xbf16> -> vector<8x512xbf16>
    %c0_3 = arith.constant 0 : index
    %c0_4 = arith.constant 0 : index
    %10 = vector.load %arg2[%c0_3, %c0_4] : memref<512x128xbf16, #tpu.memory_space<vmem>>, vector<512x128xbf16>
    %cst_5 = arith.constant dense<0.000000e+00> : vector<8x128xf32>
    %11 = tpu.matmul %9, %10, %cst_5 {dimension_numbers = #tpu.dot_dimension_numbers<[1], [0], [0], [1], [0, 0, 1, 1], [], []>} : vector<8x512xbf16>, vector<512x128xbf16>, vector<8x128xf32> -> vector<8x128xf32>
    %cst_6 = arith.constant 0.000000e+00 : f32
    %12 = vector.broadcast %cst_6 : f32 to vector<8x128xf32>
    %13 = arith.cmpf ogt, %11, %12 : vector<8x128xf32>
    %cst_7 = arith.constant 2.000000e-01 : f32
    %14 = vector.broadcast %cst_7 : f32 to vector<8x128xf32>
    %15 = arith.mulf %14, %11 : vector<8x128xf32>
    %16 = arith.select %13, %11, %15 : vector<8x128xi1>, vector<8x128xf32>
    %17 = arith.truncf %16 : vector<8x128xf32> to vector<8x128xbf16>
    %c0_8 = arith.constant 0 : index
    %c0_9 = arith.constant 0 : index
    %18 = vector.load %arg3[%c0_8, %c0_9] : memref<16x8xbf16, #tpu.memory_space<vmem>>, vector<16x8xbf16>
    %cst_10 = arith.constant dense<0.000000e+00> : vector<16x128xf32>
    %19 = tpu.matmul %18, %17, %cst_10 {dimension_numbers = #tpu.dot_dimension_numbers<[1], [0], [0], [1], [0, 0, 1, 1], [], []>} : vector<16x8xbf16>, vector<8x128xbf16>, vector<16x128xf32> -> vector<16x128xf32>
    %20 = arith.truncf %19 : vector<16x128xf32> to vector<16x128xbf16>
    %21 = vector.extract_strided_slice %20 {offsets = [0, 0], sizes = [4, 128], strides = [1, 1]} : vector<16x128xbf16> to vector<4x128xbf16>
    %22 = vector.extract_strided_slice %20 {offsets = [4, 0], sizes = [4, 128], strides = [1, 1]} : vector<16x128xbf16> to vector<4x128xbf16>
    %23 = vector.extract_strided_slice %20 {offsets = [8, 0], sizes = [4, 128], strides = [1, 1]} : vector<16x128xbf16> to vector<4x128xbf16>
    %24 = vector.extract_strided_slice %20 {offsets = [12, 0], sizes = [4, 128], strides = [1, 1]} : vector<16x128xbf16> to vector<4x128xbf16>
    %25 = tpu.concatenate %21, %22, %23, %24 in 1 : vector<4x128xbf16>, vector<4x128xbf16>, vector<4x128xbf16>, vector<4x128xbf16> -> vector<4x512xbf16>
    %c0_11 = arith.constant 0 : index
    %c0_12 = arith.constant 0 : index
    %26 = vector.load %arg4[%c0_11, %c0_12] : memref<512x128xbf16, #tpu.memory_space<vmem>>, vector<512x128xbf16>
    %cst_13 = arith.constant dense<0.000000e+00> : vector<4x128xf32>
    %27 = tpu.matmul %25, %26, %cst_13 {dimension_numbers = #tpu.dot_dimension_numbers<[1], [0], [0], [1], [0, 0, 1, 1], [], []>} : vector<4x512xbf16>, vector<512x128xbf16>, vector<4x128xf32> -> vector<4x128xf32>
    %cst_14 = arith.constant dense<0.000000e+00> : vector<128xf32>
    %28 = vector.multi_reduction <add>, %27, %cst_14 [0] : vector<4x128xf32> to vector<128xf32>
    %29 = vector.shape_cast %28 : vector<128xf32> to vector<1x128xf32>
    %30 = arith.mulf %27, %27 : vector<4x128xf32>
    %cst_15 = arith.constant dense<0.000000e+00> : vector<128xf32>
    %31 = vector.multi_reduction <add>, %30, %cst_15 [0] : vector<4x128xf32> to vector<128xf32>
    %32 = vector.shape_cast %31 : vector<128xf32> to vector<1x128xf32>
    %33 = tpu.concatenate %29, %32 in 0 : vector<1x128xf32>, vector<1x128xf32> -> vector<2x128xf32>
    %c0_16 = arith.constant 0 : index
    %c0_17 = arith.constant 0 : index
    %34 = vector.load %arg22[%c0_16, %c0_17] : memref<128x16xf32, #tpu.memory_space<vmem>>, vector<128x16xf32>
    %cst_18 = arith.constant dense<0.000000e+00> : vector<2x16xf32>
    %35 = tpu.matmul %33, %34, %cst_18 {dimension_numbers = #tpu.dot_dimension_numbers<[1], [0], [0], [1], [0, 0, 1, 1], [], []>} : vector<2x128xf32>, vector<128x16xf32>, vector<2x16xf32> -> vector<2x16xf32>
    %cst_19 = arith.constant 3.125000e-02 : f32
    %36 = vector.broadcast %cst_19 : f32 to vector<2x16xf32>
    %37 = arith.mulf %35, %36 : vector<2x16xf32>
    %38 = vector.extract_strided_slice %37 {offsets = [0, 0], sizes = [1, 16], strides = [1, 1]} : vector<2x16xf32> to vector<1x16xf32>
    %39 = vector.extract_strided_slice %37 {offsets = [1, 0], sizes = [1, 16], strides = [1, 1]} : vector<2x16xf32> to vector<1x16xf32>
    %40 = arith.mulf %38, %38 : vector<1x16xf32>
    %41 = arith.subf %39, %40 : vector<1x16xf32>
    %c0_20 = arith.constant 0 : index
    %c0_21 = arith.constant 0 : index
    %42 = vector.load %arg5[%c0_20, %c0_21] : memref<1x16xf32, #tpu.memory_space<vmem>>, vector<1x16xf32>
    %cst_22 = arith.constant 9.99999974E-6 : f32
    %43 = vector.broadcast %cst_22 : f32 to vector<1x16xf32>
    %44 = arith.addf %41, %43 : vector<1x16xf32>
    %45 = math.rsqrt %44 : vector<1x16xf32>
    %46 = arith.mulf %42, %45 : vector<1x16xf32>
    %c0_23 = arith.constant 0 : index
    %c0_24 = arith.constant 0 : index
    %47 = vector.load %arg6[%c0_23, %c0_24] : memref<1x16xf32, #tpu.memory_space<vmem>>, vector<1x16xf32>
    %48 = arith.mulf %38, %46 : vector<1x16xf32>
    %49 = arith.subf %47, %48 : vector<1x16xf32>
    %50 = tpu.concatenate %46, %49 in 0 : vector<1x16xf32>, vector<1x16xf32> -> vector<2x16xf32>
    %c0_25 = arith.constant 0 : index
    %c0_26 = arith.constant 0 : index
    %51 = vector.load %arg23[%c0_25, %c0_26] : memref<16x128xf32, #tpu.memory_space<vmem>>, vector<16x128xf32>
    %cst_27 = arith.constant dense<0.000000e+00> : vector<2x128xf32>
    %52 = tpu.matmul %50, %51, %cst_27 {dimension_numbers = #tpu.dot_dimension_numbers<[1], [0], [0], [1], [0, 0, 1, 1], [], []>} : vector<2x16xf32>, vector<16x128xf32>, vector<2x128xf32> -> vector<2x128xf32>
    %53 = vector.extract_strided_slice %52 {offsets = [0, 0], sizes = [1, 128], strides = [1, 1]} : vector<2x128xf32> to vector<1x128xf32>
    %54 = vector.broadcast %53 : vector<1x128xf32> to vector<4x128xf32>
    %55 = arith.mulf %27, %54 : vector<4x128xf32>
    %56 = vector.extract_strided_slice %52 {offsets = [1, 0], sizes = [1, 128], strides = [1, 1]} : vector<2x128xf32> to vector<1x128xf32>
    %57 = vector.broadcast %56 : vector<1x128xf32> to vector<4x128xf32>
    %58 = arith.addf %55, %57 : vector<4x128xf32>
    %cst_28 = arith.constant 0.000000e+00 : f32
    %59 = vector.broadcast %cst_28 : f32 to vector<4x128xf32>
    %60 = arith.cmpf ogt, %58, %59 : vector<4x128xf32>
    %cst_29 = arith.constant 2.000000e-01 : f32
    %61 = vector.broadcast %cst_29 : f32 to vector<4x128xf32>
    %62 = arith.mulf %61, %58 : vector<4x128xf32>
    %63 = arith.select %60, %58, %62 : vector<4x128xi1>, vector<4x128xf32>
    %64 = arith.truncf %63 : vector<4x128xf32> to vector<4x128xbf16>
    %c0_30 = arith.constant 0 : index
    %c0_31 = arith.constant 0 : index
    %65 = vector.load %arg7[%c0_30, %c0_31] : memref<8x4xbf16, #tpu.memory_space<vmem>>, vector<8x4xbf16>
    %cst_32 = arith.constant dense<0.000000e+00> : vector<8x128xf32>
    %66 = tpu.matmul %65, %64, %cst_32 {dimension_numbers = #tpu.dot_dimension_numbers<[1], [0], [0], [1], [0, 0, 1, 1], [], []>} : vector<8x4xbf16>, vector<4x128xbf16>, vector<8x128xf32> -> vector<8x128xf32>
    %67 = arith.truncf %66 : vector<8x128xf32> to vector<8x128xbf16>
    %68 = vector.extract_strided_slice %67 {offsets = [0, 0], sizes = [2, 128], strides = [1, 1]} : vector<8x128xbf16> to vector<2x128xbf16>
    %69 = vector.extract_strided_slice %67 {offsets = [2, 0], sizes = [2, 128], strides = [1, 1]} : vector<8x128xbf16> to vector<2x128xbf16>
    %70 = vector.extract_strided_slice %67 {offsets = [4, 0], sizes = [2, 128], strides = [1, 1]} : vector<8x128xbf16> to vector<2x128xbf16>
    %71 = vector.extract_strided_slice %67 {offsets = [6, 0], sizes = [2, 128], strides = [1, 1]} : vector<8x128xbf16> to vector<2x128xbf16>
    %72 = tpu.concatenate %68, %69, %70, %71 in 1 : vector<2x128xbf16>, vector<2x128xbf16>, vector<2x128xbf16>, vector<2x128xbf16> -> vector<2x512xbf16>
    %c0_33 = arith.constant 0 : index
    %c0_34 = arith.constant 0 : index
    %73 = vector.load %arg8[%c0_33, %c0_34] : memref<512x64xbf16, #tpu.memory_space<vmem>>, vector<512x64xbf16>
    %cst_35 = arith.constant dense<0.000000e+00> : vector<2x64xf32>
    %74 = tpu.matmul %72, %73, %cst_35 {dimension_numbers = #tpu.dot_dimension_numbers<[1], [0], [0], [1], [0, 0, 1, 1], [], []>} : vector<2x512xbf16>, vector<512x64xbf16>, vector<2x64xf32> -> vector<2x64xf32>
    %cst_36 = arith.constant 0.000000e+00 : f32
    %75 = vector.broadcast %cst_36 : f32 to vector<2x64xf32>
    %76 = arith.maximumf %74, %75 : vector<2x64xf32>
    %c0_37 = arith.constant 0 : index
    %c0_38 = arith.constant 0 : index
    %77 = vector.load %arg9[%c0_37, %c0_38] : memref<6x2xbf16, #tpu.memory_space<vmem>>, vector<6x2xbf16>
    %78 = arith.truncf %76 : vector<2x64xf32> to vector<2x64xbf16>
    %cst_39 = arith.constant dense<0.000000e+00> : vector<6x64xf32>
    %79 = tpu.matmul %77, %78, %cst_39 {dimension_numbers = #tpu.dot_dimension_numbers<[1], [0], [0], [1], [0, 0, 1, 1], [], []>} : vector<6x2xbf16>, vector<2x64xbf16>, vector<6x64xf32> -> vector<6x64xf32>
    %80 = arith.truncf %79 : vector<6x64xf32> to vector<6x64xbf16>
    %81 = vector.extract_strided_slice %80 {offsets = [0, 0], sizes = [2, 64], strides = [1, 1]} : vector<6x64xbf16> to vector<2x64xbf16>
    %82 = vector.extract_strided_slice %80 {offsets = [2, 0], sizes = [2, 64], strides = [1, 1]} : vector<6x64xbf16> to vector<2x64xbf16>
    %83 = vector.extract_strided_slice %80 {offsets = [4, 0], sizes = [2, 64], strides = [1, 1]} : vector<6x64xbf16> to vector<2x64xbf16>
    %84 = tpu.concatenate %81, %82, %83 in 1 : vector<2x64xbf16>, vector<2x64xbf16>, vector<2x64xbf16> -> vector<2x192xbf16>
    %c0_40 = arith.constant 0 : index
    %c0_41 = arith.constant 0 : index
    %85 = vector.load %arg10[%c0_40, %c0_41] : memref<192x256xbf16, #tpu.memory_space<vmem>>, vector<192x256xbf16>
    %cst_42 = arith.constant dense<0.000000e+00> : vector<2x256xf32>
    %86 = tpu.matmul %84, %85, %cst_42 {dimension_numbers = #tpu.dot_dimension_numbers<[1], [0], [0], [1], [0, 0, 1, 1], [], []>} : vector<2x192xbf16>, vector<192x256xbf16>, vector<2x256xf32> -> vector<2x256xf32>
    %87 = vector.extract_strided_slice %86 {offsets = [0, 0], sizes = [2, 128], strides = [1, 1]} : vector<2x256xf32> to vector<2x128xf32>
    %88 = vector.extract_strided_slice %86 {offsets = [0, 128], sizes = [2, 128], strides = [1, 1]} : vector<2x256xf32> to vector<2x128xf32>
    %89 = tpu.concatenate %87, %88 in 0 : vector<2x128xf32>, vector<2x128xf32> -> vector<4x128xf32>
    %cst_43 = arith.constant dense<0.000000e+00> : vector<128xf32>
    %90 = vector.multi_reduction <add>, %89, %cst_43 [0] : vector<4x128xf32> to vector<128xf32>
    %91 = vector.shape_cast %90 : vector<128xf32> to vector<1x128xf32>
    %92 = arith.mulf %89, %89 : vector<4x128xf32>
    %cst_44 = arith.constant dense<0.000000e+00> : vector<128xf32>
    %93 = vector.multi_reduction <add>, %92, %cst_44 [0] : vector<4x128xf32> to vector<128xf32>
    %94 = vector.shape_cast %93 : vector<128xf32> to vector<1x128xf32>
    %95 = tpu.concatenate %91, %94 in 0 : vector<1x128xf32>, vector<1x128xf32> -> vector<2x128xf32>
    %c0_45 = arith.constant 0 : index
    %c0_46 = arith.constant 0 : index
    %96 = vector.load %arg22[%c0_45, %c0_46] : memref<128x16xf32, #tpu.memory_space<vmem>>, vector<128x16xf32>
    %cst_47 = arith.constant dense<0.000000e+00> : vector<2x16xf32>
    %97 = tpu.matmul %95, %96, %cst_47 {dimension_numbers = #tpu.dot_dimension_numbers<[1], [0], [0], [1], [0, 0, 1, 1], [], []>} : vector<2x128xf32>, vector<128x16xf32>, vector<2x16xf32> -> vector<2x16xf32>
    %cst_48 = arith.constant 3.125000e-02 : f32
    %98 = vector.broadcast %cst_48 : f32 to vector<2x16xf32>
    %99 = arith.mulf %97, %98 : vector<2x16xf32>
    %100 = vector.extract_strided_slice %99 {offsets = [0, 0], sizes = [1, 16], strides = [1, 1]} : vector<2x16xf32> to vector<1x16xf32>
    %101 = vector.extract_strided_slice %99 {offsets = [1, 0], sizes = [1, 16], strides = [1, 1]} : vector<2x16xf32> to vector<1x16xf32>
    %102 = arith.mulf %100, %100 : vector<1x16xf32>
    %103 = arith.subf %101, %102 : vector<1x16xf32>
    %c0_49 = arith.constant 0 : index
    %c0_50 = arith.constant 0 : index
    %104 = vector.load %arg11[%c0_49, %c0_50] : memref<1x16xf32, #tpu.memory_space<vmem>>, vector<1x16xf32>
    %cst_51 = arith.constant 9.99999974E-6 : f32
    %105 = vector.broadcast %cst_51 : f32 to vector<1x16xf32>
    %106 = arith.addf %103, %105 : vector<1x16xf32>
    %107 = math.rsqrt %106 : vector<1x16xf32>
    %108 = arith.mulf %104, %107 : vector<1x16xf32>
    %c0_52 = arith.constant 0 : index
    %c0_53 = arith.constant 0 : index
    %109 = vector.load %arg12[%c0_52, %c0_53] : memref<1x16xf32, #tpu.memory_space<vmem>>, vector<1x16xf32>
    %110 = arith.mulf %100, %108 : vector<1x16xf32>
    %111 = arith.subf %109, %110 : vector<1x16xf32>
    %112 = tpu.concatenate %108, %111 in 0 : vector<1x16xf32>, vector<1x16xf32> -> vector<2x16xf32>
    %c0_54 = arith.constant 0 : index
    %c0_55 = arith.constant 0 : index
    %113 = vector.load %arg23[%c0_54, %c0_55] : memref<16x128xf32, #tpu.memory_space<vmem>>, vector<16x128xf32>
    %cst_56 = arith.constant dense<0.000000e+00> : vector<2x128xf32>
    %114 = tpu.matmul %112, %113, %cst_56 {dimension_numbers = #tpu.dot_dimension_numbers<[1], [0], [0], [1], [0, 0, 1, 1], [], []>} : vector<2x16xf32>, vector<16x128xf32>, vector<2x128xf32> -> vector<2x128xf32>
    %115 = vector.extract_strided_slice %114 {offsets = [0, 0], sizes = [1, 128], strides = [1, 1]} : vector<2x128xf32> to vector<1x128xf32>
    %116 = vector.broadcast %115 : vector<1x128xf32> to vector<4x128xf32>
    %117 = arith.mulf %89, %116 : vector<4x128xf32>
    %118 = vector.extract_strided_slice %114 {offsets = [1, 0], sizes = [1, 128], strides = [1, 1]} : vector<2x128xf32> to vector<1x128xf32>
    %119 = vector.broadcast %118 : vector<1x128xf32> to vector<4x128xf32>
    %120 = arith.addf %117, %119 : vector<4x128xf32>
    %cst_57 = arith.constant 0.000000e+00 : f32
    %121 = vector.broadcast %cst_57 : f32 to vector<4x128xf32>
    %122 = arith.maximumf %58, %121 : vector<4x128xf32>
    %cst_58 = arith.constant 0.000000e+00 : f32
    %123 = vector.broadcast %cst_58 : f32 to vector<4x128xf32>
    %124 = arith.maximumf %120, %123 : vector<4x128xf32>
    %c0_59 = arith.constant 0 : index
    %c0_60 = arith.constant 0 : index
    %125 = vector.load %arg13[%c0_59, %c0_60] : memref<12x4xbf16, #tpu.memory_space<vmem>>, vector<12x4xbf16>
    %126 = arith.truncf %122 : vector<4x128xf32> to vector<4x128xbf16>
    %cst_61 = arith.constant dense<0.000000e+00> : vector<12x128xf32>
    %127 = tpu.matmul %125, %126, %cst_61 {dimension_numbers = #tpu.dot_dimension_numbers<[1], [0], [0], [1], [0, 0, 1, 1], [], []>} : vector<12x4xbf16>, vector<4x128xbf16>, vector<12x128xf32> -> vector<12x128xf32>
    %128 = arith.truncf %127 : vector<12x128xf32> to vector<12x128xbf16>
    %c0_62 = arith.constant 0 : index
    %c0_63 = arith.constant 0 : index
    %129 = vector.load %arg14[%c0_62, %c0_63] : memref<12x4xbf16, #tpu.memory_space<vmem>>, vector<12x4xbf16>
    %130 = arith.truncf %124 : vector<4x128xf32> to vector<4x128xbf16>
    %cst_64 = arith.constant dense<0.000000e+00> : vector<12x128xf32>
    %131 = tpu.matmul %129, %130, %cst_64 {dimension_numbers = #tpu.dot_dimension_numbers<[1], [0], [0], [1], [0, 0, 1, 1], [], []>} : vector<12x4xbf16>, vector<4x128xbf16>, vector<12x128xf32> -> vector<12x128xf32>
    %132 = arith.truncf %131 : vector<12x128xf32> to vector<12x128xbf16>
    %133 = vector.extract_strided_slice %128 {offsets = [0, 0], sizes = [4, 128], strides = [1, 1]} : vector<12x128xbf16> to vector<4x128xbf16>
    %134 = vector.extract_strided_slice %132 {offsets = [0, 0], sizes = [4, 128], strides = [1, 1]} : vector<12x128xbf16> to vector<4x128xbf16>
    %135 = vector.extract_strided_slice %128 {offsets = [4, 0], sizes = [4, 128], strides = [1, 1]} : vector<12x128xbf16> to vector<4x128xbf16>
    %136 = vector.extract_strided_slice %132 {offsets = [4, 0], sizes = [4, 128], strides = [1, 1]} : vector<12x128xbf16> to vector<4x128xbf16>
    %137 = vector.extract_strided_slice %128 {offsets = [8, 0], sizes = [4, 128], strides = [1, 1]} : vector<12x128xbf16> to vector<4x128xbf16>
    %138 = vector.extract_strided_slice %132 {offsets = [8, 0], sizes = [4, 128], strides = [1, 1]} : vector<12x128xbf16> to vector<4x128xbf16>
    %139 = tpu.concatenate %133, %134, %135, %136, %137, %138 in 1 : vector<4x128xbf16>, vector<4x128xbf16>, vector<4x128xbf16>, vector<4x128xbf16>, vector<4x128xbf16>, vector<4x128xbf16> -> vector<4x768xbf16>
    %c0_65 = arith.constant 0 : index
    %c0_66 = arith.constant 0 : index
    %140 = vector.load %arg15[%c0_65, %c0_66] : memref<768x256xbf16, #tpu.memory_space<vmem>>, vector<768x256xbf16>
    %cst_67 = arith.constant dense<0.000000e+00> : vector<4x256xf32>
    %141 = tpu.matmul %139, %140, %cst_67 {dimension_numbers = #tpu.dot_dimension_numbers<[1], [0], [0], [1], [0, 0, 1, 1], [], []>} : vector<4x768xbf16>, vector<768x256xbf16>, vector<4x256xf32> -> vector<4x256xf32>
    %142 = vector.extract_strided_slice %141 {offsets = [0, 0], sizes = [4, 128], strides = [1, 1]} : vector<4x256xf32> to vector<4x128xf32>
    %143 = vector.extract_strided_slice %141 {offsets = [0, 128], sizes = [4, 128], strides = [1, 1]} : vector<4x256xf32> to vector<4x128xf32>
    %144 = tpu.concatenate %142, %143 in 0 : vector<4x128xf32>, vector<4x128xf32> -> vector<8x128xf32>
    %cst_68 = arith.constant dense<0.000000e+00> : vector<128xf32>
    %145 = vector.multi_reduction <add>, %144, %cst_68 [0] : vector<8x128xf32> to vector<128xf32>
    %146 = vector.shape_cast %145 : vector<128xf32> to vector<1x128xf32>
    %147 = arith.mulf %144, %144 : vector<8x128xf32>
    %cst_69 = arith.constant dense<0.000000e+00> : vector<128xf32>
    %148 = vector.multi_reduction <add>, %147, %cst_69 [0] : vector<8x128xf32> to vector<128xf32>
    %149 = vector.shape_cast %148 : vector<128xf32> to vector<1x128xf32>
    %150 = tpu.concatenate %146, %149 in 0 : vector<1x128xf32>, vector<1x128xf32> -> vector<2x128xf32>
    %c0_70 = arith.constant 0 : index
    %c0_71 = arith.constant 0 : index
    %151 = vector.load %arg24[%c0_70, %c0_71] : memref<128x8xf32, #tpu.memory_space<vmem>>, vector<128x8xf32>
    %cst_72 = arith.constant dense<0.000000e+00> : vector<2x8xf32>
    %152 = tpu.matmul %150, %151, %cst_72 {dimension_numbers = #tpu.dot_dimension_numbers<[1], [0], [0], [1], [0, 0, 1, 1], [], []>} : vector<2x128xf32>, vector<128x8xf32>, vector<2x8xf32> -> vector<2x8xf32>
    %cst_73 = arith.constant 7.812500e-03 : f32
    %153 = vector.broadcast %cst_73 : f32 to vector<2x8xf32>
    %154 = arith.mulf %152, %153 : vector<2x8xf32>
    %155 = vector.extract_strided_slice %154 {offsets = [0, 0], sizes = [1, 8], strides = [1, 1]} : vector<2x8xf32> to vector<1x8xf32>
    %156 = vector.extract_strided_slice %154 {offsets = [1, 0], sizes = [1, 8], strides = [1, 1]} : vector<2x8xf32> to vector<1x8xf32>
    %157 = arith.mulf %155, %155 : vector<1x8xf32>
    %158 = arith.subf %156, %157 : vector<1x8xf32>
    %c0_74 = arith.constant 0 : index
    %c0_75 = arith.constant 0 : index
    %159 = vector.load %arg16[%c0_74, %c0_75] : memref<1x8xf32, #tpu.memory_space<vmem>>, vector<1x8xf32>
    %cst_76 = arith.constant 9.99999974E-6 : f32
    %160 = vector.broadcast %cst_76 : f32 to vector<1x8xf32>
    %161 = arith.addf %158, %160 : vector<1x8xf32>
    %162 = math.rsqrt %161 : vector<1x8xf32>
    %163 = arith.mulf %159, %162 : vector<1x8xf32>
    %c0_77 = arith.constant 0 : index
    %c0_78 = arith.constant 0 : index
    %164 = vector.load %arg17[%c0_77, %c0_78] : memref<1x8xf32, #tpu.memory_space<vmem>>, vector<1x8xf32>
    %165 = arith.mulf %155, %163 : vector<1x8xf32>
    %166 = arith.subf %164, %165 : vector<1x8xf32>
    %167 = tpu.concatenate %163, %166 in 0 : vector<1x8xf32>, vector<1x8xf32> -> vector<2x8xf32>
    %c0_79 = arith.constant 0 : index
    %c0_80 = arith.constant 0 : index
    %168 = vector.load %arg25[%c0_79, %c0_80] : memref<8x128xf32, #tpu.memory_space<vmem>>, vector<8x128xf32>
    %cst_81 = arith.constant dense<0.000000e+00> : vector<2x128xf32>
    %169 = tpu.matmul %167, %168, %cst_81 {dimension_numbers = #tpu.dot_dimension_numbers<[1], [0], [0], [1], [0, 0, 1, 1], [], []>} : vector<2x8xf32>, vector<8x128xf32>, vector<2x128xf32> -> vector<2x128xf32>
    %170 = vector.extract_strided_slice %169 {offsets = [0, 0], sizes = [1, 128], strides = [1, 1]} : vector<2x128xf32> to vector<1x128xf32>
    %171 = vector.broadcast %170 : vector<1x128xf32> to vector<8x128xf32>
    %172 = arith.mulf %144, %171 : vector<8x128xf32>
    %173 = vector.extract_strided_slice %169 {offsets = [1, 0], sizes = [1, 128], strides = [1, 1]} : vector<2x128xf32> to vector<1x128xf32>
    %174 = vector.broadcast %173 : vector<1x128xf32> to vector<8x128xf32>
    %175 = arith.addf %172, %174 : vector<8x128xf32>
    %cst_82 = arith.constant 0.000000e+00 : f32
    %176 = vector.broadcast %cst_82 : f32 to vector<8x128xf32>
    %177 = arith.maximumf %11, %176 : vector<8x128xf32>
    %cst_83 = arith.constant 0.000000e+00 : f32
    %178 = vector.broadcast %cst_83 : f32 to vector<8x128xf32>
    %179 = arith.maximumf %175, %178 : vector<8x128xf32>
    %c0_84 = arith.constant 0 : index
    %c0_85 = arith.constant 0 : index
    %180 = vector.load %arg18[%c0_84, %c0_85] : memref<24x8xbf16, #tpu.memory_space<vmem>>, vector<24x8xbf16>
    %181 = arith.truncf %177 : vector<8x128xf32> to vector<8x128xbf16>
    %cst_86 = arith.constant dense<0.000000e+00> : vector<24x128xf32>
    %182 = tpu.matmul %180, %181, %cst_86 {dimension_numbers = #tpu.dot_dimension_numbers<[1], [0], [0], [1], [0, 0, 1, 1], [], []>} : vector<24x8xbf16>, vector<8x128xbf16>, vector<24x128xf32> -> vector<24x128xf32>
    %183 = arith.truncf %182 : vector<24x128xf32> to vector<24x128xbf16>
    %c0_87 = arith.constant 0 : index
    %c0_88 = arith.constant 0 : index
    %184 = vector.load %arg19[%c0_87, %c0_88] : memref<24x8xbf16, #tpu.memory_space<vmem>>, vector<24x8xbf16>
    %185 = arith.truncf %179 : vector<8x128xf32> to vector<8x128xbf16>
    %cst_89 = arith.constant dense<0.000000e+00> : vector<24x128xf32>
    %186 = tpu.matmul %184, %185, %cst_89 {dimension_numbers = #tpu.dot_dimension_numbers<[1], [0], [0], [1], [0, 0, 1, 1], [], []>} : vector<24x8xbf16>, vector<8x128xbf16>, vector<24x128xf32> -> vector<24x128xf32>
    %187 = arith.truncf %186 : vector<24x128xf32> to vector<24x128xbf16>
    %188 = vector.extract_strided_slice %183 {offsets = [0, 0], sizes = [8, 128], strides = [1, 1]} : vector<24x128xbf16> to vector<8x128xbf16>
    %189 = vector.extract_strided_slice %187 {offsets = [0, 0], sizes = [8, 128], strides = [1, 1]} : vector<24x128xbf16> to vector<8x128xbf16>
    %190 = vector.extract_strided_slice %183 {offsets = [8, 0], sizes = [8, 128], strides = [1, 1]} : vector<24x128xbf16> to vector<8x128xbf16>
    %191 = vector.extract_strided_slice %187 {offsets = [8, 0], sizes = [8, 128], strides = [1, 1]} : vector<24x128xbf16> to vector<8x128xbf16>
    %192 = vector.extract_strided_slice %183 {offsets = [16, 0], sizes = [8, 128], strides = [1, 1]} : vector<24x128xbf16> to vector<8x128xbf16>
    %193 = vector.extract_strided_slice %187 {offsets = [16, 0], sizes = [8, 128], strides = [1, 1]} : vector<24x128xbf16> to vector<8x128xbf16>
    %194 = tpu.concatenate %188, %189, %190, %191, %192, %193 in 1 : vector<8x128xbf16>, vector<8x128xbf16>, vector<8x128xbf16>, vector<8x128xbf16>, vector<8x128xbf16>, vector<8x128xbf16> -> vector<8x768xbf16>
    %c0_90 = arith.constant 0 : index
    %c0_91 = arith.constant 0 : index
    %195 = vector.load %arg20[%c0_90, %c0_91] : memref<768x256xbf16, #tpu.memory_space<vmem>>, vector<768x256xbf16>
    %cst_92 = arith.constant dense<0.000000e+00> : vector<8x256xf32>
    %196 = tpu.matmul %194, %195, %cst_92 {dimension_numbers = #tpu.dot_dimension_numbers<[1], [0], [0], [1], [0, 0, 1, 1], [], []>} : vector<8x768xbf16>, vector<768x256xbf16>, vector<8x256xf32> -> vector<8x256xf32>
    %197 = vector.extract_strided_slice %196 {offsets = [0, 0], sizes = [8, 128], strides = [1, 1]} : vector<8x256xf32> to vector<8x128xf32>
    %198 = vector.extract_strided_slice %196 {offsets = [0, 128], sizes = [8, 128], strides = [1, 1]} : vector<8x256xf32> to vector<8x128xf32>
    %199 = tpu.concatenate %197, %198 in 0 : vector<8x128xf32>, vector<8x128xf32> -> vector<16x128xf32>
    %c0_93 = arith.constant 0 : index
    %c0_94 = arith.constant 0 : index
    %200 = vector.load %arg21[%c0_93, %c0_94] : memref<1x128xf32, #tpu.memory_space<vmem>>, vector<1x128xf32>
    %201 = vector.broadcast %200 : vector<1x128xf32> to vector<16x128xf32>
    %202 = arith.addf %199, %201 : vector<16x128xf32>
    %203 = math.tanh %202 : vector<16x128xf32>
    %c0_95 = arith.constant 0 : index
    %c0_96 = arith.constant 0 : index
    %204 = vector.load %arg26[%c0_95, %c0_96] : memref<16x128xf32, #tpu.memory_space<vmem>>, vector<16x128xf32>
    tpu.vector_store %arg26[%c0_95, %c0_96], %203 {strides = array<i32>} : memref<16x128xf32, #tpu.memory_space<vmem>>, vector<16x128xf32>,
    return
  }
}

</mosaic_0001>

<bundles_post_ra>
// kernel: part_unet2_forward.1
= control target key start
LH: loop header
LB: loop body
LE: loop exit
PB: predicated region body
PF: predicated region fallthrough
CT: control target
= control target key end

     0   :  { %s6603_s0 = inlined_call_operand.vmem [shape: f32[16,128], index: 0, kind: input, shape index: {}]   ;;  %s6604_s1 = inlined_call_operand.vmem [shape: bf16[32,16], index: 1, kind: input, shape index: {}]   ;;  %s6605_s2 = inlined_call_operand.vmem [shape: bf16[512,128], index: 2, kind: input, shape index: {}]   ;;  %s6606_s3 = inlined_call_operand.vmem [shape: bf16[16,8], index: 3, kind: input, shape index: {}]   ;;  %s6607_s4 = inlined_call_operand.hbm [shape: bf16[512,128], index: 4, kind: input, shape index: {}]   ;;  %s6608_s5 = inlined_call_operand.vmem [shape: f32[1,16], index: 5, kind: input, shape index: {}]   ;;  %s6609_s6 = inlined_call_operand.hbm [shape: f32[1,16], index: 6, kind: input, shape index: {}]   ;;  %s6610_s7 = inlined_call_operand.vmem [shape: bf16[8,4], index: 7, kind: input, shape index: {}]   ;;  %s6611_s8 = inlined_call_operand.vmem [shape: bf16[512,64], index: 8, kind: input, shape index: {}]   ;;  %s6612_s9 = inlined_call_operand.vmem [shape: bf16[6,2], index: 9, kind: input, shape index: {}]   ;;  %s6613_s10 = inlined_call_operand.vmem [shape: bf16[192,256], index: 10, kind: input, shape index: {}]   ;;  %s6614_s11 = inlined_call_operand.hbm [shape: f32[1,16], index: 11, kind: input, shape index: {}]   ;;  %s6615_s12 = inlined_call_operand.hbm [shape: f32[1,16], index: 12, kind: input, shape index: {}]   ;;  %s6616_s13 = inlined_call_operand.vmem [shape: bf16[12,4], index: 13, kind: input, shape index: {}]   ;;  %s6617_s14 = inlined_call_operand.vmem [shape: bf16[12,4], index: 14, kind: input, shape index: {}]   ;;  %s6618_s15 = inlined_call_operand.vmem [shape: bf16[768,256], index: 15, kind: input, shape index: {}]   ;;  %s6619_s16 = inlined_call_operand.hbm [shape: f32[1,8], index: 16, kind: input, shape index: {}]   ;;  %s6620_s17 = inlined_call_operand.hbm [shape: f32[1,8], index: 17, kind: input, shape index: {}]   ;;  %s6621_s18 = inlined_call_operand.vmem [shape: bf16[24,8], index: 18, kind: input, shape index: {}]   ;;  %s6622_s19 = inlined_call_operand.vmem [shape: bf16[24,8], index: 19, kind: input, shape index: {}]   ;;  %s6623_s20 = inlined_call_operand.hbm [shape: bf16[768,256], index: 20, kind: input, shape index: {}]   ;;  %s6624_s21 = inlined_call_operand.hbm [shape: f32[1,128], index: 21, kind: input, shape index: {}]   ;;  %s6625_s22 = inlined_call_operand.vmem [shape: f32[128,16], index: 22, kind: input, shape index: {}]   ;;  %s6626_s23 = inlined_call_operand.vmem [shape: f32[16,128], index: 23, kind: input, shape index: {}]   ;;  %s6627_s24 = inlined_call_operand.vmem [shape: f32[128,8], index: 24, kind: input, shape index: {}]   ;;  %s6628_s25 = inlined_call_operand.vmem [shape: f32[8,128], index: 25, kind: input, shape index: {}]   ;;  %s6629_s26 = inlined_call_operand.vmem [shape: f32[16,128], index: 26, kind: output, shape index: {}]  }
   0x1   :  { %6637 = sst [smem:[#allocation20_spill]] %s6603_s0 }
   0x2   :  { %6638 = sst [smem:[#allocation21_spill]] %s6604_s1 }
   0x3   :  { %6639 = sst [smem:[#allocation22_spill]] %s6605_s2 }
   0x4   :  { %6640 = sst [smem:[#allocation23_spill]] %s6606_s3 }
   0x5   :  { %6641 = sst [smem:[#allocation24_spill]] %s6607_s4 }
   0x6   :  { %6642 = sst [smem:[#allocation25_spill]] %s6608_s5 }
   0x7   :  { %6643 = sst [smem:[#allocation26_spill]] %s6609_s6 }
   0x8   :  { %6644 = sst [smem:[#allocation27_spill]] %s6610_s7 }
   0x9   :  { %6645 = sst [smem:[#allocation28_spill]] %s6611_s8 }
   0xa   :  { %6646 = sst [smem:[#allocation29_spill]] %s6612_s9 }
   0xb   :  { %6647 = sst [smem:[#allocation30_spill]] %s6613_s10 }
   0xc   :  { %31 = vsyncpa [#allocation3], 0 }
   0xd   :  { %32 = vsyncpa [#allocation5], 0 }
   0xe   :  { %33 = vsyncpa [#allocation8], 0 }
   0xf   :  { %34 = vsyncpa [#allocation11], 0 }
  0x10   :  { %35 = vsyncpa [#allocation14], 0  ;;  %s5450_s27 = smov [#allocation4]   ;;  %s5451_s7 = smov [#allocation7]  }
  0x11   :  { %s64_s3 = sshll.u32 %s5450_s27, 4  ;;  %s92_s28 = sshll.u32 %s5451_s7, 4  ;;  %s65_s3 = int_to_ptr.vmem [resolvable:$true] %s64_s3  ;;  %s93_s28 = int_to_ptr.vmem [resolvable:$true] %s92_s28 }
  0x12   :  { %s6648_s29 = sld [smem:[#allocation26_spill]] }
  0x18   :  { %s5264_s0 = scalar_lea.hbm %s6648_s29, 16 }
  0x19   :  { %p5265_p0 = scmp.ne.s32.totalorder %s6648_s29, %s5264_s0  ;;  %p5268_p1 = scmp.lt.u32.totalorder %s5264_s0, %s6648_s29 }
  0x1b   :  { %p5270_p2 = pnand %p5268_p1, %p5265_p0 }
  0x1d   :  { %5273 = shalt.err (!%p5270_p2)
}
  0x1e   :  { %s5274_s10 = scalar_lea.vmem %s65_s3, 16  ;;  %s5278_s6 = scalar_lea.vmem %s65_s3, 32 }
  0x1f   :  { %p5275_p3 = scmp.ne.s32.totalorder %s65_s3, %s5274_s10  ;;  %p5279_p4 = scmp.lt.s32.totalorder %s65_s3, %s65_s3 }
  0x20   :  { %p5280_p5 = scmp.lt.s32.totalorder %s5278_s6, %s5274_s10 }
  0x22   :  { %p5281_p6 = por %p5280_p5, %p5279_p4 }
  0x24   :  { %p5282_p7 = pnand %p5281_p6, %p5275_p3 }
  0x26   :  { %5285 = shalt.err (!%p5282_p7)
}
  0x27   :  { %67 = dma.hbm_to_vmem [thread:$0]  %s6648_s29, 16, %s65_s3, [#allocation5]  }
  0x28   :  { %s5286_s4 = scalar_lea.hbm %s6615_s12, 16 }
  0x29   :  { %p5287_p8 = scmp.ne.s32.totalorder %s6615_s12, %s5286_s4  ;;  %p5290_p9 = scmp.lt.u32.totalorder %s5286_s4, %s6615_s12 }
  0x2b   :  { %p5292_p10 = pnand %p5290_p9, %p5287_p8 }
  0x2d   :  { %5295 = shalt.err (!%p5292_p10)
}
  0x2e   :  { %s5296_s5 = scalar_lea.vmem %s93_s28, 16  ;;  %s5300_s10 = scalar_lea.vmem %s93_s28, 32 }
  0x2f   :  { %p5297_p11 = scmp.ne.s32.totalorder %s93_s28, %s5296_s5  ;;  %p5301_p12 = scmp.lt.s32.totalorder %s93_s28, %s93_s28 }
  0x30   :  { %p5302_p13 = scmp.lt.s32.totalorder %s5300_s10, %s5296_s5 }
  0x32   :  { %p5303_p0 = por %p5302_p13, %p5301_p12 }
  0x34   :  { %p5304_p1 = pnand %p5303_p0, %p5297_p11 }
  0x36   :  { %5307 = shalt.err (!%p5304_p1)
}
  0x37   :  { %95 = dma.hbm_to_vmem [thread:$0]  %s6615_s12, 16, %s93_s28, [#allocation8]  }
  0x38   :  { %s5452_s6 = smov [#allocation10]   ;;  %s5453_s27 = smov [#allocation2]  }
  0x39   :  { %s118_s1 = sshll.u32 %s5452_s6, 4  ;;  %s49_s7 = sshll.u32 %s5453_s27, 4  ;;  %s119_s1 = int_to_ptr.vmem [resolvable:$true] %s118_s1  ;;  %s5625_s7 = int_to_ptr.vmem [resolvable:$true] %s49_s7 }
  0x3a   :  { %s5308_s9 = scalar_lea.hbm %s6620_s17, 16 }
  0x3b   :  { %p5309_p2 = scmp.ne.s32.totalorder %s6620_s17, %s5308_s9  ;;  %p5312_p3 = scmp.lt.u32.totalorder %s5308_s9, %s6620_s17 }
  0x3d   :  { %p5314_p4 = pnand %p5312_p3, %p5309_p2 }
  0x3f   :  { %5317 = shalt.err (!%p5314_p4)
}
  0x40   :  { %s5318_s12 = scalar_lea.vmem %s119_s1, 16  ;;  %s5322_s28 = scalar_lea.vmem %s119_s1, 32 }
  0x41   :  { %p5319_p5 = scmp.ne.s32.totalorder %s119_s1, %s5318_s12  ;;  %p5323_p6 = scmp.lt.s32.totalorder %s119_s1, %s119_s1 }
  0x42   :  { %p5324_p7 = scmp.lt.s32.totalorder %s5322_s28, %s5318_s12 }
  0x44   :  { %p5325_p8 = por %p5324_p7, %p5323_p6 }
  0x46   :  { %p5326_p9 = pnand %p5325_p8, %p5319_p5 }
  0x48   :  { %5329 = shalt.err (!%p5326_p9)
}
  0x49   :  { %121 = dma.hbm_to_vmem [thread:$0]  %s6620_s17, 16, %s119_s1, [#allocation11]  }
  0x4a   :  { %s6649_s27 = sld [smem:[#allocation24_spill]] }
  0x50   :  { %s5330_s8 = scalar_lea.hbm %s6649_s27, 4096 }
  0x51   :  { %p5331_p10 = scmp.ne.s32.totalorder %s6649_s27, %s5330_s8  ;;  %p5334_p11 = scmp.lt.u32.totalorder %s5330_s8, %s6649_s27 }
  0x53   :  { %p5336_p12 = pnand %p5334_p11, %p5331_p10 }
  0x55   :  { %5339 = shalt.err (!%p5336_p12)
}
  0x56   :  { %s5340_s2 = scalar_lea.vmem %s5625_s7, 4096  ;;  %p5345_p0 = scmp.lt.s32.totalorder %s5625_s7, %s5625_s7 }
  0x57   :  { %p5341_p13 = scmp.ne.s32.totalorder %s5625_s7, %s5340_s2  ;;  %p5346_p1 = scmp.lt.s32.totalorder %s5340_s2, %s5340_s2 }
  0x59   :  { %p5347_p2 = por %p5346_p1, %p5345_p0 }
  0x5b   :  { %p5348_p3 = pnand %p5347_p2, %p5341_p13 }
  0x5d   :  { %5351 = shalt.err (!%p5348_p3)
}
  0x5e   :  { %s5454_s17 = smov 64   ;;  %s5455_s1 = smov 4  }
  0x5f   :  { %55 = dma.hbm_to_vmem [thread:$0]  %s6649_s27, 4096, %s5625_s7, [#allocation3], %s5454_s17, %s5454_s17, %s5455_s1  }
  0x60   :  { %s5456_s28 = smov [#allocation6]   ;;  %s5457_s3 = smov [#allocation9]  }
  0x61   :  { %s82_s10 = sshll.u32 %s5456_s28, 4  ;;  %s108_s29 = sshll.u32 %s5457_s3, 4  ;;  %s83_s10 = int_to_ptr.vmem [resolvable:$true] %s82_s10  ;;  %s109_s29 = int_to_ptr.vmem [resolvable:$true] %s108_s29 }
  0x62   :  { %s5352_s4 = scalar_lea.hbm %s6614_s11, 16 }
  0x63   :  { %p5353_p4 = scmp.ne.s32.totalorder %s6614_s11, %s5352_s4  ;;  %p5356_p5 = scmp.lt.u32.totalorder %s5352_s4, %s6614_s11 }
  0x65   :  { %p5358_p6 = pnand %p5356_p5, %p5353_p4 }
  0x67   :  { %5361 = shalt.err (!%p5358_p6)
}
  0x68   :  { %s5362_s7 = scalar_lea.vmem %s83_s10, 16  ;;  %s5366_s27 = scalar_lea.vmem %s83_s10, 32 }
  0x69   :  { %p5363_p7 = scmp.ne.s32.totalorder %s83_s10, %s5362_s7  ;;  %p5367_p8 = scmp.lt.s32.totalorder %s83_s10, %s83_s10 }
  0x6a   :  { %p5368_p9 = scmp.lt.s32.totalorder %s5366_s27, %s5362_s7 }
  0x6c   :  { %p5369_p10 = por %p5368_p9, %p5367_p8 }
  0x6e   :  { %p5370_p11 = pnand %p5369_p10, %p5363_p7 }
  0x70   :  { %5373 = shalt.err (!%p5370_p11)
}
  0x71   :  { %85 = dma.hbm_to_vmem [thread:$0]  %s6614_s11, 16, %s83_s10, [#allocation5]  }
  0x72   :  { %s5374_s3 = scalar_lea.hbm %s6619_s16, 16 }
  0x73   :  { %p5375_p12 = scmp.ne.s32.totalorder %s6619_s16, %s5374_s3  ;;  %p5378_p13 = scmp.lt.u32.totalorder %s5374_s3, %s6619_s16 }
  0x75   :  { %p5380_p0 = pnand %p5378_p13, %p5375_p12 }
  0x77   :  { %5383 = shalt.err (!%p5380_p0)
}
  0x78   :  { %s5384_s0 = scalar_lea.vmem %s109_s29, 16  ;;  %s5388_s30 = scalar_lea.vmem %s109_s29, 32 }
  0x79   :  { %p5385_p1 = scmp.ne.s32.totalorder %s109_s29, %s5384_s0  ;;  %p5389_p2 = scmp.lt.s32.totalorder %s109_s29, %s109_s29 }
  0x7a   :  { %p5390_p3 = scmp.lt.s32.totalorder %s5388_s30, %s5384_s0 }
  0x7c   :  { %p5391_p4 = por %p5390_p3, %p5389_p2 }
  0x7e   :  { %p5392_p5 = pnand %p5391_p4, %p5385_p1 }
  0x80   :  { %5395 = shalt.err (!%p5392_p5)
}
  0x81   :  { %111 = dma.hbm_to_vmem [thread:$0]  %s6619_s16, 16, %s109_s29, [#allocation8]  }
  0x82   :  { %s5458_s2 = smov [#allocation12]   ;;  %s5396_s5 = scalar_lea.hbm %s6623_s20, 12288 }
  0x83   :  { %s131_s7 = sshll.u32 %s5458_s2, 4  ;;  %p5397_p6 = scmp.ne.s32.totalorder %s6623_s20, %s5396_s5  ;;  %s132_s7 = int_to_ptr.vmem [resolvable:$true] %s131_s7 }
  0x84   :  { %p5400_p7 = scmp.lt.u32.totalorder %s5396_s5, %s6623_s20 }
  0x86   :  { %p5402_p8 = pnand %p5400_p7, %p5397_p6 }
  0x88   :  { %5405 = shalt.err (!%p5402_p8)
}
  0x89   :  { %s5406_s8 = scalar_lea.vmem %s132_s7, 12288  ;;  %p5411_p10 = scmp.lt.s32.totalorder %s132_s7, %s132_s7 }
  0x8a   :  { %p5407_p9 = scmp.ne.s32.totalorder %s132_s7, %s5406_s8  ;;  %p5412_p11 = scmp.lt.s32.totalorder %s5406_s8, %s5406_s8 }
  0x8c   :  { %p5413_p12 = por %p5412_p11, %p5411_p10 }
  0x8e   :  { %p5414_p13 = pnand %p5413_p12, %p5407_p9 }
  0x90   :  { %5417 = shalt.err (!%p5414_p13)
}
  0x91   :  { %s5459_s16 = smov 128   ;;  %s5460_s29 = smov 8  }
  0x92   :  { %137 = dma.hbm_to_vmem [thread:$0]  %s6623_s20, 12288, %s132_s7, [#allocation11], %s5459_s16, %s5459_s16, %s5460_s29  }
  0x93   :  { %s5461_s0 = smov [#allocation13]   ;;  %s5418_s2 = scalar_lea.hbm %s6624_s21, 16 }
  0x94   :  { %s144_s30 = sshll.u32 %s5461_s0, 4  ;;  %p5419_p0 = scmp.ne.s32.totalorder %s6624_s21, %s5418_s2  ;;  %s145_s30 = int_to_ptr.vmem [resolvable:$true] %s144_s30 }
  0x95   :  { %p5422_p1 = scmp.lt.u32.totalorder %s5418_s2, %s6624_s21 }
  0x97   :  { %p5424_p2 = pnand %p5422_p1, %p5419_p0 }
  0x99   :  { %5427 = shalt.err (!%p5424_p2)
}
  0x9a   :  { %s5428_s28 = scalar_lea.vmem %s145_s30, 16  ;;  %s5432_s20 = scalar_lea.vmem %s145_s30, 32 }
  0x9b   :  { %p5429_p3 = scmp.ne.s32.totalorder %s145_s30, %s5428_s28  ;;  %p5433_p4 = scmp.lt.s32.totalorder %s145_s30, %s145_s30 }
  0x9c   :  { %p5434_p5 = scmp.lt.s32.totalorder %s5432_s20, %s5428_s28 }
  0x9e   :  { %p5435_p6 = por %p5434_p5, %p5433_p4 }
  0xa0   :  { %p5436_p7 = pnand %p5435_p6, %p5429_p3 }
  0xa2   :  { %5439 = shalt.err (!%p5436_p7)
}
  0xa3   :  { %147 = dma.hbm_to_vmem [thread:$0]  %s6624_s21, 16, %s145_s30, [#allocation14]  }
  0xa4   :  { %5440 = dma.done.wait [#allocation3], 4096  }
  0xa5   :  { %5441 = vsyncadd [#allocation3], 4294963200 }
  0xa6   :  { %5442 = dma.done.wait [#allocation5], 32  }
  0xa7   :  { %5443 = vsyncadd [#allocation5], 4294967264 }
  0xa8   :  { %5444 = dma.done.wait [#allocation8], 32  }
  0xa9   :  { %5445 = vsyncadd [#allocation8], 4294967264 }
  0xaa   :  { %5446 = dma.done.wait [#allocation11], 12304  }
  0xab   :  { %5447 = vsyncadd [#allocation11], 4294954992 }
  0xac   :  { %5448 = dma.done.wait [#allocation14], 16  }
  0xad   :  { %5449 = vsyncadd [#allocation14], 4294967280  ;;  %s6650_s16 = sld [smem:[#allocation20_spill]]  ;;  %vm198_vm0 = vcmask 130048   ;;  %s6651_s0 = sld [smem:[#allocation21_spill]]  ;;  %v5462_v45 = vmov 0.0  }
  0xae   :  { %s6652_s27 = sld [smem:[#allocation22_spill]]  ;;  %vm5463_vm1 = vmmov 0   ;;  %v4860_v46 = vld [vmem:[#allocation2 + $0x40] sm:$0xff]   ;;  %v4864_v48 = vld [vmem:[#allocation2 + $0x48] sm:$0xff]   ;;  %v4868_v50 = vld [vmem:[#allocation2 + $0x50] sm:$0xff]   ;;  %vm613_vm3 = vcmask 1043456  }
  0xaf   :  { %v4862_v47 = vld [vmem:[#allocation2] sm:$0xff]   ;;  %v4866_v49 = vld [vmem:[#allocation2 + $0x8] sm:$0xff]   ;;  %v4870_v51 = vld [vmem:[#allocation2 + $0x10] sm:$0xff]   ;;  %s6653_s3 = sld [smem:[#allocation23_spill]]  ;;  %vm609_vm4 = vcmask 64512   ;;  %vm1017_vm5 = vcmask 1040384  }
  0xb0   :  { %v4872_v52 = vld [vmem:[#allocation2 + $0x58] sm:$0xff]   ;;  %v4876_v54 = vld [vmem:[#allocation2 + $0x60] sm:$0xff]   ;;  %v4880_v56 = vld [vmem:[#allocation2 + $0x68] sm:$0xff]   ;;  %s6654_s20 = sld [smem:[#allocation25_spill]]  ;;  %vm1236_vm7 = vcmask 1041408   ;;  %s6656_s11 = sld [smem:[#allocation27_spill]] }
  0xb1   :  { %v4874_v53 = vld [vmem:[#allocation2 + $0x18] sm:$0xff]   ;;  %v4878_v55 = vld [vmem:[#allocation2 + $0x20] sm:$0xff]   ;;  %v4882_v57 = vld [vmem:[#allocation2 + $0x28] sm:$0xff]   ;;  %vm1232_vm8 = vcmask 31744   ;;  %s6657_s29 = sld [smem:[#allocation29_spill]]  ;;  %vm1627_vm9 = vcmask 15360  }
  0xb2   :  { %s6658_s9 = sld [smem:[#allocation30_spill]]  ;;  %vm1680_vm10 = vcmask 523264  }
  0xb3   :  { %v181_v0 = vld [vmem:[%s6650_s16] sm:$0xff]  ;;  %v182_v1 = vld [vmem:[%s6650_s16 + $0x8] sm:$0xff] }
  0xb4   :  { %v183_v2 = vpack.c.bf16 %v182_v1, %v181_v0  ;;  %v4825_v3 = vld [vmem:[%s6651_s0] sm:$0xff]   ;;  %v4826_v4 = vld [vmem:[%s6651_s0 + $0x8] sm:$0xff]   ;;  %v4835_v13 = vld [vmem:[%s6652_s27 + $0xd0] sm:$0xff]  }
  0xb5   :  { %4551 = vmatprep.mubr.msk.bf16.mxu0 %vm198_vm0, %v4825_v3  ;;  %v4827_v5 = vld [vmem:[%s6652_s27 + $0xc0] sm:$0xff]   ;;  %v4831_v9 = vld [vmem:[%s6652_s27 + $0xc8] sm:$0xff]   ;;  %v4836_v14 = vld [vmem:[%s6652_s27 + $0x50] sm:$0xff]  }
  0xb6   :  { %4549 = vmatprep.subr.bf16.mxu0 %v183_v2  ;;  %v4828_v6 = vld [vmem:[%s6652_s27 + $0x40] sm:$0xff]   ;;  %v4832_v10 = vld [vmem:[%s6652_s27 + $0x48] sm:$0xff]   ;;  %v4837_v15 = vld [vmem:[%s6652_s27 + $0x90] sm:$0xff]  }
  0xb7   :  { %4550 = vmatpush3.bf16.msra.mxu0 %v183_v2  ;;  %v4829_v7 = vld [vmem:[%s6652_s27 + $0x80] sm:$0xff]   ;;  %4342 = vmatprep.subr.bf16.mxu1 %v4828_v6  ;;  %v4833_v11 = vld [vmem:[%s6652_s27 + $0x88] sm:$0xff]   ;;  %v4838_v16 = vld [vmem:[%s6652_s27 + $0x10] sm:$0xff]  }
  0xb8   :  { %4364 = vmatprep.subr.bf16.mxu0 %v4827_v5  ;;  %v4830_v8 = vld [vmem:[%s6652_s27] sm:$0xff]   ;;  %v4834_v12 = vld [vmem:[%s6652_s27 + $0x8] sm:$0xff]   ;;  %v4839_v17 = vld [vmem:[%s6652_s27 + $0xd8] sm:$0xff]  }
  0xb9   :  { %4343 = vmatpush3.bf16.msra.mxu1 %v4830_v8  ;;  %v4840_v18 = vld [vmem:[%s6652_s27 + $0x58] sm:$0xff]   ;;  %v4843_v21 = vld [vmem:[%s6652_s27 + $0xe0] sm:$0xff]   ;;  %v4847_v25 = vld [vmem:[%s6652_s27 + $0xe8] sm:$0xff]  }
  0xba   :  { %4552 = vmatmul.mubr.msk.bf16.vlgmr.msra.gmra.mrb[0].mxu0 %vm198_vm0, %v4826_v4  ;;  %4344 = vmatprep.subr.bf16.mxu1 %v4832_v10  ;;  %v4841_v19 = vld [vmem:[%s6652_s27 + $0x98] sm:$0xff]   ;;  %v4844_v22 = vld [vmem:[%s6652_s27 + $0x60] sm:$0xff]   ;;  %v4848_v26 = vld [vmem:[%s6652_s27 + $0x68] sm:$0xff]  }
  0xbb   :  { %4365 = vmatpush3.bf16.msra.mxu0 %v4829_v7  ;;  %v4842_v20 = vld [vmem:[%s6652_s27 + $0x18] sm:$0xff]   ;;  %v4845_v23 = vld [vmem:[%s6652_s27 + $0xa0] sm:$0xff]   ;;  %v4849_v27 = vld [vmem:[%s6652_s27 + $0xa8] sm:$0xff]  }
  0xbc   :  { %4366 = vmatprep.subr.bf16.mxu0 %v4831_v9  ;;  %v4846_v24 = vld [vmem:[%s6652_s27 + $0x20] sm:$0xff]   ;;  %v4850_v28 = vld [vmem:[%s6652_s27 + $0x28] sm:$0xff]   ;;  %v4851_v29 = vld [vmem:[%s6652_s27 + $0xf0] sm:$0xff]  }
  0xbd   :  { %4345 = vmatpush3.bf16.msra.mxu1 %v4834_v12  ;;  %v4852_v30 = vld [vmem:[%s6652_s27 + $0x70] sm:$0xff]   ;;  %v4855_v33 = vld [vmem:[%s6652_s27 + $0xf8] sm:$0xff]   ;;  %v4861_v8 = vld [vmem:[#allocation2 + $0xc0] sm:$0xff]  }
  0xbe   :  { %4346 = vmatprep.subr.bf16.mxu1 %v4836_v14  ;;  %v4853_v31 = vld [vmem:[%s6652_s27 + $0xb0] sm:$0xff]   ;;  %v4856_v34 = vld [vmem:[%s6652_s27 + $0x78] sm:$0xff]   ;;  %v4859_v10 = vld [vmem:[%s6653_s3] sm:$0xff]   ;;  %s6655_s3 = sld [smem:[#allocation28_spill]] }
  0xbf   :  { %4367 = vmatpush3.bf16.msra.mxu0 %v4833_v11  ;;  %v4854_v32 = vld [vmem:[%s6652_s27 + $0x30] sm:$0xff]   ;;  %v4857_v35 = vld [vmem:[%s6652_s27 + $0xb8] sm:$0xff]   ;;  %v4863_v11 = vld [vmem:[#allocation2 + $0x80] sm:$0xff]  }
  0xc0   :  { %4368 = vmatprep.subr.bf16.mxu0 %v4835_v13  ;;  %v4858_v36 = vld [vmem:[%s6652_s27 + $0x38] sm:$0xff]   ;;  %v4865_v12 = vld [vmem:[#allocation2 + $0xc8] sm:$0xff]   ;;  %v4869_v14 = vld [vmem:[#allocation2 + $0xd0] sm:$0xff]  }
  0xc1   :  { %4347 = vmatpush3.bf16.msra.mxu1 %v4838_v16  ;;  %v4867_v13 = vld [vmem:[#allocation2 + $0x88] sm:$0xff]   ;;  %v4873_v16 = vld [vmem:[#allocation2 + $0xd8] sm:$0xff]  }
  0xc2   :  { %4348 = vmatprep.subr.bf16.mxu1 %v4840_v18  ;;  %v4877_v18 = vld [vmem:[#allocation2 + $0xe0] sm:$0xff]  }
  0xc3   :  { %4369 = vmatpush3.bf16.msra.mxu0 %v4837_v15  ;;  %v4871_v15 = vld [vmem:[#allocation2 + $0x90] sm:$0xff]  }
  0xc4   :  { %4370 = vmatprep.subr.bf16.mxu0 %v4839_v17  ;;  %v4875_v17 = vld [vmem:[#allocation2 + $0x98] sm:$0xff]  }
  0xc5   :  { %4349 = vmatpush3.bf16.msra.mxu1 %v4842_v20  ;;  %v4881_v20 = vld [vmem:[#allocation2 + $0xe8] sm:$0xff]  }
  0xc6   :  { %4350 = vmatprep.subr.bf16.mxu1 %v4844_v22  ;;  %v4884_v22 = vld [vmem:[#allocation2 + $0x70] sm:$0xff]  }
  0xc7   :  { %4371 = vmatpush3.bf16.msra.mxu0 %v4841_v19  ;;  %v4879_v19 = vld [vmem:[#allocation2 + $0xa0] sm:$0xff]  }
  0xc8   :  { %4372 = vmatprep.subr.bf16.mxu0 %v4843_v21  ;;  %v4883_v21 = vld [vmem:[#allocation2 + $0xa8] sm:$0xff]  }
  0xc9   :  { %4351 = vmatpush3.bf16.msra.mxu1 %v4846_v24  ;;  %v4886_v24 = vld [vmem:[#allocation2 + $0x30] sm:$0xff]  }
  0xca   :  { %4352 = vmatprep.subr.bf16.mxu1 %v4848_v26  ;;  %v4888_v26 = vld [vmem:[#allocation2 + $0x78] sm:$0xff]  }
  0xcb   :  { %4373 = vmatpush3.bf16.msra.mxu0 %v4845_v23  ;;  %v4885_v23 = vld [vmem:[#allocation2 + $0xf0] sm:$0xff]  }
  0xcc   :  { %4374 = vmatprep.subr.bf16.mxu0 %v4847_v25  ;;  %v4887_v25 = vld [vmem:[#allocation2 + $0xb0] sm:$0xff]  }
  0xcd   :  { %4353 = vmatpush3.bf16.msra.mxu1 %v4850_v28  ;;  %v4890_v28 = vld [vmem:[#allocation2 + $0x38] sm:$0xff]  }
  0xce   :  { %4354 = vmatprep.subr.bf16.mxu1 %v4852_v30  ;;  %v5464_v30 = vmov 0.0|0.0  }
  0xcf   :  { %4375 = vmatpush3.bf16.msra.mxu0 %v4849_v27  ;;  %v4889_v27 = vld [vmem:[#allocation2 + $0xf8] sm:$0xff]  }
  0xd0   :  { %4376 = vmatprep.subr.bf16.mxu0 %v4851_v29  ;;  %v4891_v29 = vld [vmem:[#allocation2 + $0xb8] sm:$0xff]  }
  0xd1   :  { %4355 = vmatpush3.bf16.msra.mxu1 %v4854_v32 }
  0xd2   :  { %4356 = vmatprep.subr.bf16.mxu1 %v4856_v34  ;;  %v1019_v34 = vld [vmem:[%s6625_s22] sm:$0xff] }
  0xd3   :  { %4377 = vmatpush3.bf16.msra.mxu0 %v4853_v31 }
  0xd4   :  { %4378 = vmatprep.subr.bf16.mxu0 %v4855_v33 }
  0xd5   :  { %4357 = vmatpush3.bf16.msra.mxu1 %v4858_v36 }
  0xd6   :  { %4555 = vmatprep.subr.bf16.mxu1 %v5462_v45 }
  0xd7   :  { %4379 = vmatpush3.bf16.msra.mxu0 %v4857_v35  ;;  %v1020_v35 = vld [vmem:[%s6625_s22 + $0x8] sm:$0xff] }
  0xd8   :  { %4388 = vmatprep.subr.bf16.mxu0 %v4860_v46  ;;  %v1023_v46 = vld [vmem:[%s6625_s22 + $0x20] sm:$0xff] }
 0x18d   :  { %v4553_v37 = vpop.f32.mrb[0].mxu0 }
 0x18e   :  { %v239_v38 = vpop.f32.mrb[1].mxu0 }
 0x18f   :  { %v4554_v39 = vpop.f32.mrb[2].mxu0 }
 0x190   :  { %v255_v40 = vpack.c.bf16 %v4554_v39, %v4553_v37  ;;  %v242_v41 = vpop.f32.mrb[3].mxu0 }
 0x191   :  { %v254_v42 = vpack.c.bf16 %v242_v41, %v239_v38  ;;  %v5836_v41 = vpack.c.bf16 %v1020_v35, %v1019_v34 }
 0x192   :  { %v260_v43 = vrot.slane %v255_v40, 4 }
 0x193   :  { %v257_v44 = vrot.slane %v254_v42, 4 }
 0x194   :  { %590 = vmatprep.mubr.bf16.mxu0 %v260_v43  ;;  %v1022_v43 = vld [vmem:[%s6625_s22 + $0x18] sm:$0xff] }
 0x195   :  { %550 = vmatprep.mubr.bf16.mxu1 %v257_v44  ;;  %591 = vmatmul.mubr.bf16.vlgmr.msra.gmra.mrb[4].mxu0 %v255_v40 }
 0x196   :  { %551 = vmatmul.mubr.bf16.vlgmr.msra.gmra.mrb[0].mxu1 %v254_v42  ;;  %4389 = vmatpush3.bf16.msra.mxu0 %v4862_v47  ;;  %v1021_v42 = vld [vmem:[%s6625_s22 + $0x10] sm:$0xff]  ;;  %v1024_v47 = vld [vmem:[%s6625_s22 + $0x28] sm:$0xff] }
 0x197   :  { %4557 = vmatprep.mubr.msk.bf16.mxu1 %vm5463_vm1, %v5462_v45  ;;  %4390 = vmatprep.subr.bf16.mxu0 %v4864_v48  ;;  %v5845_v44 = vpack.c.bf16 %v1022_v43, %v1021_v42  ;;  %v5857_v48 = vpack.c.bf16 %v1024_v47, %v1023_v46  ;;  %v1118_v42 = vlaneseq }
 0x199   :  { %v1119_v46 = vshrl.u32 %v1118_v42, 7  ;;  %v4912_v42 = vld [vmem:[%s6655_s3 + $0x68] sm:$0xff]  }
 0x19a   :  { %4391 = vmatpush3.bf16.msra.mxu0 %v4866_v49  ;;  %v1025_v49 = vld [vmem:[%s6625_s22 + $0x30] sm:$0xff] }
 0x19b   :  { %4392 = vmatprep.subr.bf16.mxu0 %v4868_v50  ;;  %v1026_v50 = vld [vmem:[%s6625_s22 + $0x38] sm:$0xff] }
 0x19e   :  { %4393 = vmatpush3.bf16.msra.mxu0 %v4870_v51  ;;  %v5868_v51 = vpack.c.bf16 %v1026_v50, %v1025_v49 }
 0x19f   :  { %4394 = vmatprep.subr.bf16.mxu0 %v4872_v52  ;;  %v1027_v52 = vld [vmem:[%s6625_s22 + $0x40] sm:$0xff] }
 0x1a2   :  { %4395 = vmatpush3.bf16.msra.mxu0 %v4874_v53  ;;  %v1028_v53 = vld [vmem:[%s6625_s22 + $0x48] sm:$0xff] }
 0x1a3   :  { %4396 = vmatprep.subr.bf16.mxu0 %v4876_v54  ;;  %v5878_v54 = vpack.c.bf16 %v1028_v53, %v1027_v52  ;;  %v1111_v53 = vld [vmem:[%s6654_s20] sm:$0x1] }
 0x1a6   :  { %4397 = vmatpush3.bf16.msra.mxu0 %v4878_v55  ;;  %v1029_v55 = vld [vmem:[%s6625_s22 + $0x50] sm:$0xff] }
 0x1a7   :  { %4398 = vmatprep.subr.bf16.mxu0 %v4880_v56  ;;  %v1030_v56 = vld [vmem:[%s6625_s22 + $0x58] sm:$0xff] }
 0x1aa   :  { %4399 = vmatpush3.bf16.msra.mxu0 %v4882_v57  ;;  %v5888_v57 = vpack.c.bf16 %v1030_v56, %v1029_v55 }
 0x1ab   :  { %4400 = vmatprep.subr.bf16.mxu0 %v4884_v22 }
 0x1ae   :  { %4401 = vmatpush3.bf16.msra.mxu0 %v4886_v24 }
 0x1af   :  { %4402 = vmatprep.subr.bf16.mxu0 %v4888_v26 }
 0x1b2   :  { %4403 = vmatpush3.bf16.msra.mxu0 %v4890_v28  ;;  %v1142_v28 = vld [vmem:[%s6626_s23] sm:$0xff] }
 0x268   :  { %v4380_v58 = vpop.f32.mrb[4].mxu0 }
 0x269   :  { %v4358_v59 = vpop.f32.mrb[0].mxu1  ;;  %v4381_v60 = vpop.f32.mrb[5].mxu0 }
 0x26a   :  { %v4382_v61 = vadd.f32 %v4381_v60, %v4380_v58  ;;  %v4359_v62 = vpop.f32.mrb[1].mxu1  ;;  %v4383_v63 = vpop.f32.mrb[6].mxu0  ;;  %v1031_v58 = vld [vmem:[%s6625_s22 + $0x60] sm:$0xff] }
 0x26b   :  { %v4360_v0 = vadd.f32 %v4359_v62, %v4358_v59  ;;  %v4361_v1 = vpop.f32.mrb[2].mxu1  ;;  %v4384_v2 = vpop.f32.mrb[7].mxu0  ;;  %v1032_v59 = vld [vmem:[%s6625_s22 + $0x68] sm:$0xff]  ;;  %v1034_v62 = vld [vmem:[%s6625_s22 + $0x78] sm:$0xff] }
 0x26c   :  { %v4362_v3 = vpop.f32.mrb[3].mxu1  ;;  %v5898_v60 = vpack.c.bf16 %v1032_v59, %v1031_v58  ;;  %v1132_v58 = vld [vmem:[#allocation4] sm:$0x1] }
 0x26d   :  { %v5819_v4 = vadd.f32 %v4382_v61, %v4360_v0  ;;  %v1033_v61 = vld [vmem:[%s6625_s22 + $0x70] sm:$0xff] }
 0x26e   :  { %v5907_v63 = vpack.c.bf16 %v1034_v62, %v1033_v61  ;;  %v5939_v61 = vsub.s32 0, %v1119_v46 }
 0x26f   :  { %vm598_vm2 = vcmp.gt.f32.partialorder %v5819_v4, 0.0  ;;  %v599_v5 = vmul.f32 0.2, %v5819_v4 }
 0x271   :  { %v600_v6 = vsel %vm598_vm2, %v5819_v4, %v599_v5 }
 0x272   :  { %v601_v7 = vpack.c.bf16 %v600_v6, %v600_v6 }
 0x274   :  { %v615_v9 = vsel %vm613_vm3, %v601_v7, 0 }
 0x275   :  { %4556 = vmatpush3.bf16.msra.mxu1 %v615_v9 }
 0x276   :  { %4410 = vmatprep.subr.bf16.mxu1 %v4861_v8 }
 0x278   :  { %4558 = vmatmul.mubr.msk.bf16.vlgmr.msra.gmra.mrb[4].mxu1 %vm609_vm4, %v4859_v10 }
 0x279   :  { %4411 = vmatpush3.bf16.msra.mxu1 %v4863_v11 }
 0x27a   :  { %4412 = vmatprep.subr.bf16.mxu1 %v4865_v12 }
 0x27d   :  { %4413 = vmatpush3.bf16.msra.mxu1 %v4867_v13 }
 0x27e   :  { %4414 = vmatprep.subr.bf16.mxu1 %v4869_v14 }
 0x281   :  { %4415 = vmatpush3.bf16.msra.mxu1 %v4871_v15 }
 0x282   :  { %4416 = vmatprep.subr.bf16.mxu1 %v4873_v16 }
 0x285   :  { %4417 = vmatpush3.bf16.msra.mxu1 %v4875_v17 }
 0x286   :  { %4418 = vmatprep.subr.bf16.mxu1 %v4877_v18 }
 0x289   :  { %4419 = vmatpush3.bf16.msra.mxu1 %v4879_v19 }
 0x28a   :  { %4420 = vmatprep.subr.bf16.mxu1 %v4881_v20 }
 0x28d   :  { %4421 = vmatpush3.bf16.msra.mxu1 %v4883_v21 }
 0x28e   :  { %4422 = vmatprep.subr.bf16.mxu1 %v4885_v23 }
 0x291   :  { %4423 = vmatpush3.bf16.msra.mxu1 %v4887_v25 }
 0x292   :  { %4424 = vmatprep.subr.bf16.mxu1 %v4889_v27 }
 0x295   :  { %4425 = vmatpush3.bf16.msra.mxu1 %v4891_v29  ;;  %v1143_v29 = vld [vmem:[%s6626_s23 + $0x8] sm:$0xff] }
 0x296   :  { %4721 = vmatprep.subr.bf16.mxu1 %v5464_v30 }
 0x34b   :  { %v651_v31 = vpop.f32.mrb[4].mxu1 }
 0x34c   :  { %v4559_v32 = vpop.f32.mrb[5].mxu1 }
 0x34d   :  { %v654_v33 = vpop.f32.mrb[6].mxu1 }
 0x34e   :  { %v658_v36 = vpack.c.bf16 %v654_v33, %v651_v31  ;;  %v4560_v37 = vpop.f32.mrb[7].mxu1  ;;  %v5928_v31 = vpack.c.bf16 %v1143_v29, %v1142_v28  ;;  %v4892_v28 = vld [vmem:[%s6655_s3 + $0x40] sm:$0xff]  }
 0x350   :  { %v660_v38 = vrot.slane %v658_v36, 2  ;;  %v664_v39 = vrot.slane %v658_v36, 6  ;;  %v662_v40 = vrot.slane %v658_v36, 4 }
 0x352   :  { %954 = vmatprep.mubr.bf16.mxu0 %v660_v38  ;;  %994 = vmatprep.mubr.bf16.mxu1 %v664_v39  ;;  %v5465_v39 = vmov 1966171168  }
 0x353   :  { %955 = vmatmul.mubr.bf16.vlgmr.msra.gmra.mrb[8].mxu0 %v658_v36  ;;  %995 = vmatmul.mubr.bf16.vlgmr.msra.gmra.mrb[8].mxu1 %v662_v40  ;;  %v1116_v40 = vunpack.c.l.s4 %v5465_v39  ;;  %v4908_v39 = vld [vmem:[%s6655_s3 + $0x60] sm:$0xff]  }
 0x354   :  { %4723 = vmatpush3.bf16.msra.mxu1 %v5836_v41  ;;  %4593 = vmatprep.mubr.msk.f32.mxu1 %vm5463_vm1, %v5462_v45 }
 0x355   :  { %4724 = vmatprep.subr.bf16.mxu1 %v5464_v30  ;;  %v1117_v43 = vunpack.c.0.s8 %v1116_v40  ;;  %v4910_v40 = vld [vmem:[%s6655_s3 + $0x20] sm:$0xff]  }
 0x357   :  { %v5932_v47 = vsub.s32 %v1117_v43, %v1119_v46  ;;  %v4914_v43 = vld [vmem:[%s6655_s3 + $0x28] sm:$0xff]  }
 0x358   :  { %4726 = vmatpush3.bf16.msra.mxu1 %v5845_v44 }
 0x359   :  { %4727 = vmatprep.subr.bf16.mxu1 %v5464_v30 }
 0x35c   :  { %4729 = vmatpush3.bf16.msra.mxu1 %v5857_v48 }
 0x35d   :  { %4730 = vmatprep.subr.bf16.mxu1 %v5464_v30 }
 0x360   :  { %4732 = vmatpush3.bf16.msra.mxu1 %v5868_v51 }
 0x361   :  { %4733 = vmatprep.subr.bf16.mxu1 %v5464_v30 }
 0x364   :  { %4735 = vmatpush3.bf16.msra.mxu1 %v5878_v54 }
 0x365   :  { %4736 = vmatprep.subr.bf16.mxu1 %v5464_v30 }
 0x368   :  { %4738 = vmatpush3.bf16.msra.mxu1 %v5888_v57 }
 0x369   :  { %4739 = vmatprep.subr.bf16.mxu1 %v5464_v30 }
 0x36c   :  { %4741 = vmatpush3.bf16.msra.mxu1 %v5898_v60 }
 0x36d   :  { %4742 = vmatprep.subr.bf16.mxu1 %v5464_v30 }
 0x370   :  { %4744 = vmatpush3.bf16.msra.mxu1 %v5907_v63 }
 0x371   :  { %4745 = vmatprep.subr.bf16.mxu1 %v5464_v30 }
 0x426   :  { %v4404_v0 = vpop.f32.mrb[8].mxu0  ;;  %v4426_v1 = vpop.f32.mrb[8].mxu1 }
 0x427   :  { %v4405_v2 = vpop.f32.mrb[9].mxu0  ;;  %v4427_v3 = vpop.f32.mrb[9].mxu1 }
 0x428   :  { %v4406_v5 = vadd.f32 %v4405_v2, %v4404_v0  ;;  %v4428_v6 = vadd.f32 %v4427_v3, %v4426_v1  ;;  %v4407_v7 = vpop.f32.mrb[10].mxu0  ;;  %v4429_v8 = vpop.f32.mrb[10].mxu1  ;;  %v4893_v2 = vld [vmem:[%s6655_s3 + $0xc0] sm:$0xff]  }
 0x429   :  { %v4408_v9 = vpop.f32.mrb[11].mxu0  ;;  %v4430_v10 = vpop.f32.mrb[11].mxu1  ;;  %v4895_v3 = vld [vmem:[%s6655_s3 + $0x80] sm:$0xff]   ;;  %4476 = vmatprep.subr.bf16.mxu0 %v4893_v2  ;;  %v4901_v7 = vld [vmem:[%s6655_s3 + $0xd0] sm:$0xff]  }
 0x42a   :  { %v5912_v11 = vadd.f32 %v4428_v6, %v4406_v5  ;;  %v4897_v5 = vld [vmem:[%s6655_s3 + $0xc8] sm:$0xff]   ;;  %4477 = vmatpush3.bf16.msra.mxu0 %v4895_v3  ;;  %v4903_v8 = vld [vmem:[%s6655_s3 + $0x90] sm:$0xff]   ;;  %v4905_v9 = vld [vmem:[%s6655_s3 + $0xd8] sm:$0xff]  }
 0x42b   :  { %4478 = vmatprep.subr.bf16.mxu0 %v4897_v5  ;;  %v4899_v6 = vld [vmem:[%s6655_s3 + $0x88] sm:$0xff]   ;;  %v4907_v10 = vld [vmem:[%s6655_s3 + $0x98] sm:$0xff]  }
 0x42c   :  { %v1002_v12 = vsel %vm613_vm3, %v5912_v11, 0.0  ;;  %v1009_v13 = vmul.f32 %v5912_v11, %v5912_v11 }
 0x42d   :  { %v1003_v14 = vrot.slane %v1002_v12, 4 }
 0x42e   :  { %v1010_v15 = vsel %vm613_vm3, %v1009_v13, 0.0  ;;  %4479 = vmatpush3.bf16.msra.mxu0 %v4899_v6  ;;  %v4911_v13 = vld [vmem:[%s6655_s3 + $0xa0] sm:$0xff]  }
 0x42f   :  { %v1004_v16 = vadd.f32 %v1003_v14, %v1002_v12  ;;  %v1011_v17 = vrot.slane %v1010_v15, 4  ;;  %4480 = vmatprep.subr.bf16.mxu0 %v4901_v7  ;;  %v4909_v12 = vld [vmem:[%s6655_s3 + $0xe0] sm:$0xff]   ;;  %v4913_v14 = vld [vmem:[%s6655_s3 + $0xe8] sm:$0xff]  }
 0x431   :  { %v1005_v18 = vrot.slane %v1004_v16, 2  ;;  %v1012_v19 = vadd.f32 %v1011_v17, %v1010_v15  ;;  %v4915_v15 = vld [vmem:[%s6655_s3 + $0xa8] sm:$0xff]   ;;  %v4919_v17 = vld [vmem:[%s6655_s3 + $0xb0] sm:$0xff]  }
 0x432   :  { %4481 = vmatpush3.bf16.msra.mxu0 %v4903_v8 }
 0x433   :  { %v1006_v20 = vadd.f32 %v1005_v18, %v1004_v16  ;;  %v1013_v21 = vrot.slane %v1012_v19, 2  ;;  %4482 = vmatprep.subr.bf16.mxu0 %v4905_v9  ;;  %v4917_v16 = vld [vmem:[%s6655_s3 + $0xf0] sm:$0xff]   ;;  %v5988_v18 = vsub.s32 1, %v1119_v46 }
 0x434   :  { %v4916_v46 = vld [vmem:[%s6655_s3 + $0x70] sm:$0xff]  }
 0x435   :  { %v1007_v22 = vrot.slane %v1006_v20, 1  ;;  %v1014_v23 = vadd.f32 %v1013_v21, %v1012_v19 }
 0x436   :  { %4483 = vmatpush3.bf16.msra.mxu0 %v4907_v10 }
 0x437   :  { %v1015_v24 = vrot.slane %v1014_v23, 1  ;;  %v1008_v25 = vadd.f32 %v1007_v22, %v1006_v20  ;;  %4484 = vmatprep.subr.bf16.mxu0 %v4909_v12 }
 0x439   :  { %v1016_v26 = vadd.f32 %v1015_v24, %v1014_v23 }
 0x43a   :  { %4485 = vmatpush3.bf16.msra.mxu0 %v4911_v13  ;;  %v4924_v13 = vld [vmem:[%s6658_s9] ss:$8 sps:$4 sm:$0xff]  }
 0x43b   :  { %v1018_v27 = vsel %vm1017_vm5, %v1008_v25, %v1016_v26  ;;  %4486 = vmatprep.subr.bf16.mxu0 %v4913_v14  ;;  %v4926_v14 = vld [vmem:[%s6658_s9 + $0x4] ss:$8 sps:$4 sm:$0xff]  }
 0x43c   :  { %4594 = vmatmul.mubr.f32.vlgmr.msra.gmra.mrb[12].mxu1 %v1018_v27 }
 0x43d   :  { %4600 = vmatprep.mubr.msk.f32.mxu1 %vm5463_vm1, %v5462_v45  ;;  %4747 = vmatpush3.bf16.msra.mxu1 %v5928_v31 }
 0x43e   :  { %4603 = vmatprep.subr.bf16.mxu1 %v5462_v45  ;;  %4487 = vmatpush3.bf16.msra.mxu0 %v4915_v15  ;;  %v4929_v15 = vld [vmem:[%s6658_s9 + $0x14] ss:$8 sps:$4 sm:$0xff]  }
 0x43f   :  { %4488 = vmatprep.subr.bf16.mxu0 %v4917_v16  ;;  %v4927_v16 = vld [vmem:[%s6658_s9 + $0x10] ss:$8 sps:$4 sm:$0xff]  }
 0x442   :  { %4489 = vmatpush3.bf16.msra.mxu0 %v4919_v17  ;;  %v4932_v17 = vld [vmem:[%s6658_s9 + $0x24] ss:$8 sps:$4 sm:$0xff]  }
 0x50f   :  { %v1101_v32 = vpop.f32.mrb[12].mxu1 }
 0x510   :  { %v1105_v33 = vmul.f32 0.03125, %v1101_v32  ;;  %v4595_v34 = vpop.f32.mrb[13].mxu1  ;;  %v4894_v32 = vld [vmem:[%s6655_s3] sm:$0xff]  }
 0x511   :  { %v4898_v34 = vld [vmem:[%s6655_s3 + $0x8] sm:$0xff]  }
 0x512   :  { %v1106_v35 = vmul.f32 %v1105_v33, %v1105_v33 }
 0x514   :  { %v1108_v36 = vrot.slane %v1106_v35, 7  ;;  %v4900_v35 = vld [vmem:[%s6655_s3 + $0x50] sm:$0xff]  }
 0x516   :  { %v1110_v37 = vsub.f32 %v1105_v33, %v1108_v36  ;;  %v4902_v36 = vld [vmem:[%s6655_s3 + $0x10] sm:$0xff]  }
 0x518   :  { %v1112_v38 = vadd.f32 1e-05, %v1110_v37  ;;  %v4904_v37 = vld [vmem:[%s6655_s3 + $0x58] sm:$0xff]  }
 0x51a   :  { %5254 = vrsqrt.f32 %v1112_v38  ;;  %v4906_v38 = vld [vmem:[%s6655_s3 + $0x18] sm:$0xff]  }
 0x524   :  { %v5255_v49 = vpop.eup %5254 }
 0x525   :  { %v1121_v50 = vrot.slane %v5255_v49, %v5932_v47  ;;  %v4918_v49 = vld [vmem:[%s6655_s3 + $0x30] sm:$0xff]  }
 0x527   :  { %v1122_v52 = vcombine.high %v1121_v50, %v1121_v50  ;;  %v4920_v50 = vld [vmem:[%s6655_s3 + $0x78] sm:$0xff]  }
 0x529   :  { %v1129_v55 = vrot.slane %v1122_v52, %v5932_v47  ;;  %v4921_v52 = vld [vmem:[%s6655_s3 + $0xf8] sm:$0xff]  }
 0x52a   :  { %4490 = vmatprep.subr.bf16.mxu0 %v4921_v52 }
 0x52b   :  { %v1131_v56 = vmul.f32 %v1129_v55, %v1111_v53  ;;  %v4922_v53 = vld [vmem:[%s6655_s3 + $0x38] sm:$0xff]  }
 0x52c   :  { %v4923_v55 = vld [vmem:[%s6655_s3 + $0xb8] sm:$0xff]  }
 0x52d   :  { %v1133_v59 = vmul.f32 %v1131_v56, %v1105_v33  ;;  %v4896_v33 = vld [vmem:[%s6655_s3 + $0x48] sm:$0xff]   ;;  %4491 = vmatpush3.bf16.msra.mxu0 %v4923_v55 }
 0x52e   :  { %4748 = vmatprep.subr.bf16.mxu0 %v5464_v30 }
 0x52f   :  { %v1134_v62 = vsub.f32 %v1132_v58, %v1133_v59 }
 0x531   :  { %v1139_v0 = vrot.slane %v1134_v62, %v5939_v61 }
 0x533   :  { %v1141_v1 = vsel %vm1017_vm5, %v1131_v56, %v1139_v0 }
 0x534   :  { %4601 = vmatmul.mubr.msk.f32.vlgmr.msra.gmra.mrb[14].mxu1 %vm198_vm0, %v1141_v1 }
 0x535   :  { %4605 = vmatprep.mubr.msk.bf16.mxu1 %vm5463_vm1, %v5462_v45 }
 0x607   :  { %v1213_v19 = vpop.f32.mrb[14].mxu1 }
 0x608   :  { %v1220_v20 = vrot.slane %v1213_v19, %v5939_v61  ;;  %v4602_v21 = vpop.f32.mrb[15].mxu1  ;;  %v1225_v23 = vrot.slane %v1213_v19, %v5988_v18  ;;  %v4930_v19 = vld [vmem:[%s6658_s9 + $0x20] ss:$8 sps:$4 sm:$0xff]  }
 0x609   :  { %v4933_v21 = vld [vmem:[%s6658_s9 + $0x30] ss:$8 sps:$4 sm:$0xff]  }
 0x60a   :  { %v1221_v22 = vmul.f32 %v1220_v20, %v5912_v11  ;;  %v1231_v11 = vld [vmem:[%s6656_s11] sm:$0xf]  ;;  %v4935_v20 = vld [vmem:[%s6658_s9 + $0x34] ss:$8 sps:$4 sm:$0xff]  }
 0x60c   :  { %v5993_v24 = vadd.f32 %v1225_v23, %v1221_v22  ;;  %v4938_v22 = vld [vmem:[%s6658_s9 + $0x44] ss:$8 sps:$4 sm:$0xff]   ;;  %v4936_v23 = vld [vmem:[%s6658_s9 + $0x40] ss:$8 sps:$4 sm:$0xff]  }
 0x60e   :  { %vm1227_vm6 = vcmp.gt.f32.partialorder %v5993_v24, 0.0  ;;  %v1228_v25 = vmul.f32 0.2, %v5993_v24 }
 0x610   :  { %v1229_v26 = vsel %vm1227_vm6, %v5993_v24, %v1228_v25  ;;  %v4941_v25 = vld [vmem:[%s6658_s9 + $0x54] ss:$8 sps:$4 sm:$0xff]  }
 0x611   :  { %v1230_v27 = vpack.c.bf16 %v1229_v26, %v1229_v26  ;;  %v4939_v26 = vld [vmem:[%s6658_s9 + $0x50] ss:$8 sps:$4 sm:$0xff]  }
 0x613   :  { %v1238_v29 = vsel %vm1236_vm7, %v1230_v27, 0  ;;  %v4944_v27 = vld [vmem:[%s6658_s9 + $0x64] ss:$8 sps:$4 sm:$0xff]  }
 0x614   :  { %4604 = vmatpush3.bf16.msra.mxu1 %v1238_v29  ;;  %v4947_v29 = vld [vmem:[%s6658_s9 + $0x74] ss:$8 sps:$4 sm:$0xff]  }
 0x615   :  { %4454 = vmatprep.subr.bf16.mxu1 %v4892_v28  ;;  %v4942_v28 = vld [vmem:[%s6658_s9 + $0x60] ss:$8 sps:$4 sm:$0xff]  }
 0x617   :  { %4606 = vmatmul.mubr.msk.bf16.vlgmr.msra.gmra.mrb[16].mxu1 %vm1232_vm8, %v1231_v11  ;;  %v4945_v11 = vld [vmem:[%s6658_s9 + $0x70] ss:$8 sps:$4 sm:$0xff]  }
 0x618   :  { %4455 = vmatpush3.bf16.msra.mxu1 %v4894_v32  ;;  %v4950_v32 = vld [vmem:[%s6658_s9 + $0x84] ss:$8 sps:$4 sm:$0xff]  }
 0x619   :  { %4456 = vmatprep.subr.bf16.mxu1 %v4896_v33  ;;  %v4948_v33 = vld [vmem:[%s6658_s9 + $0x80] ss:$8 sps:$4 sm:$0xff]  }
 0x61c   :  { %4457 = vmatpush3.bf16.msra.mxu1 %v4898_v34  ;;  %v4953_v34 = vld [vmem:[%s6658_s9 + $0x94] ss:$8 sps:$4 sm:$0xff]  }
 0x61d   :  { %4458 = vmatprep.subr.bf16.mxu1 %v4900_v35  ;;  %v4951_v35 = vld [vmem:[%s6658_s9 + $0x90] ss:$8 sps:$4 sm:$0xff]  }
 0x620   :  { %4459 = vmatpush3.bf16.msra.mxu1 %v4902_v36  ;;  %v4956_v36 = vld [vmem:[%s6658_s9 + $0xa4] ss:$8 sps:$4 sm:$0xff]  }
 0x621   :  { %4460 = vmatprep.subr.bf16.mxu1 %v4904_v37  ;;  %v4954_v37 = vld [vmem:[%s6658_s9 + $0xa0] ss:$8 sps:$4 sm:$0xff]  }
 0x624   :  { %4461 = vmatpush3.bf16.msra.mxu1 %v4906_v38  ;;  %v4959_v38 = vld [vmem:[%s6658_s9 + $0xb4] ss:$8 sps:$4 sm:$0xff]  }
 0x625   :  { %4462 = vmatprep.subr.bf16.mxu1 %v4908_v39  ;;  %v4957_v39 = vld [vmem:[%s6658_s9 + $0xb0] ss:$8 sps:$4 sm:$0xff]  }
 0x628   :  { %4463 = vmatpush3.bf16.msra.mxu1 %v4910_v40 }
 0x629   :  { %4464 = vmatprep.subr.bf16.mxu1 %v4912_v42 }
 0x62c   :  { %4465 = vmatpush3.bf16.msra.mxu1 %v4914_v43 }
 0x62d   :  { %4466 = vmatprep.subr.bf16.mxu1 %v4916_v46 }
 0x630   :  { %4467 = vmatpush3.bf16.msra.mxu1 %v4918_v49 }
 0x631   :  { %4468 = vmatprep.subr.bf16.mxu1 %v4920_v50 }
 0x634   :  { %4469 = vmatpush3.bf16.msra.mxu1 %v4922_v53 }
 0x635   :  { %4609 = vmatprep.subr.bf16.mxu1 %v5462_v45 }
 0x6ea   :  { %v1274_v56 = vpop.f32.mrb[16].mxu1 }
 0x6eb   :  { %v1280_v58 = vpack.c.bf16 %v1274_v56, %v1274_v56  ;;  %v4607_v59 = vpop.f32.mrb[17].mxu1 }
 0x6ec   :  { %v1277_v62 = vpop.f32.mrb[18].mxu1 }
 0x6ed   :  { %v4608_v0 = vpop.f32.mrb[19].mxu1  ;;  %v1282_v1 = vrot.slane %v1280_v58, 1  ;;  %v1286_v2 = vrot.slane %v1280_v58, 3  ;;  %v1284_v3 = vrot.slane %v1280_v58, 2 }
 0x6ef   :  { %1576 = vmatprep.mubr.bf16.mxu1 %v1282_v1  ;;  %1616 = vmatprep.mubr.bf16.mxu0 %v1286_v2 }
 0x6f0   :  { %1577 = vmatmul.mubr.bf16.vlgmr.msra.gmra.mrb[20].mxu1 %v1280_v58  ;;  %1617 = vmatmul.mubr.bf16.vlgmr.msra.gmra.mrb[12].mxu0 %v1284_v3 }
 0x6f1   :  { %4611 = vmatprep.mubr.msk.bf16.mxu1 %vm5463_vm1, %v5462_v45  ;;  %4750 = vmatpush3.bf16.msra.mxu0 %v5836_v41 }
 0x6f2   :  { %4751 = vmatprep.subr.bf16.mxu0 %v5464_v30  ;;  %4647 = vmatprep.mubr.msk.f32.mxu0 %vm5463_vm1, %v5462_v45 }
 0x6f5   :  { %4753 = vmatpush3.bf16.msra.mxu0 %v5845_v44 }
 0x6f6   :  { %4754 = vmatprep.subr.bf16.mxu0 %v5464_v30 }
 0x6f9   :  { %4756 = vmatpush3.bf16.msra.mxu0 %v5857_v48 }
 0x6fa   :  { %4757 = vmatprep.subr.bf16.mxu0 %v5464_v30 }
 0x6fd   :  { %4759 = vmatpush3.bf16.msra.mxu0 %v5868_v51 }
 0x6fe   :  { %4760 = vmatprep.subr.bf16.mxu0 %v5464_v30 }
 0x701   :  { %4762 = vmatpush3.bf16.msra.mxu0 %v5878_v54 }
 0x702   :  { %4763 = vmatprep.subr.bf16.mxu0 %v5464_v30 }
 0x705   :  { %4765 = vmatpush3.bf16.msra.mxu0 %v5888_v57 }
 0x706   :  { %4766 = vmatprep.subr.bf16.mxu0 %v5464_v30 }
 0x709   :  { %4768 = vmatpush3.bf16.msra.mxu0 %v5898_v60 }
 0x70a   :  { %4769 = vmatprep.subr.bf16.mxu0 %v5464_v30 }
 0x70d   :  { %4771 = vmatpush3.bf16.msra.mxu0 %v5907_v63  ;;  %v1625_v63 = vld [vmem:[%s6657_s29] sm:$0x7] }
 0x70e   :  { %4772 = vmatprep.subr.bf16.mxu0 %v5464_v30 }
 0x7c3   :  { %v4470_v41 = vpop.f32.mrb[20].mxu1  ;;  %v4492_v44 = vpop.f32.mrb[12].mxu0 }
 0x7c4   :  { %v4471_v48 = vpop.f32.mrb[21].mxu1  ;;  %v4493_v51 = vpop.f32.mrb[13].mxu0 }
 0x7c5   :  { %v4472_v5 = vadd.f32 %v4471_v48, %v4470_v41  ;;  %v4494_v54 = vadd.f32 %v4493_v51, %v4492_v44  ;;  %v4473_v6 = vpop.f32.mrb[22].mxu1  ;;  %v4495_v7 = vpop.f32.mrb[14].mxu0 }
 0x7c6   :  { %v4474_v8 = vpop.f32.mrb[23].mxu1  ;;  %v4496_v57 = vpop.f32.mrb[15].mxu0 }
 0x7c7   :  { %v1619_v9 = vadd.f32 %v4494_v54, %v4472_v5 }
 0x7c9   :  { %v1624_v10 = vmax.f32 %v1619_v9, 0.0 }
 0x7cb   :  { %v1626_v12 = vpack.c.bf16 %v1624_v10, %v1624_v10 }
 0x7cd   :  { %v1632_v60 = vsel %vm1017_vm5, %v1626_v12, 0 }
 0x7ce   :  { %4610 = vmatpush3.bf16.msra.mxu1 %v1632_v60 }
 0x7cf   :  { %1832 = vmatprep.subr.bf16.mxu1 %v4926_v14 }
 0x7d1   :  { %4612 = vmatmul.mubr.msk.bf16.vlgmr.msra.gmra.mrb[24].mxu1 %vm1627_vm9, %v1625_v63 }
 0x7d2   :  { %1833 = vmatpush1.bf16.msra.mxu1 %v4924_v13 }
 0x7d3   :  { %1834 = vmatprep.subr.bf16.mxu1 %v4929_v15 }
 0x7d6   :  { %1835 = vmatpush1.bf16.msra.mxu1 %v4927_v16 }
 0x7d7   :  { %1836 = vmatprep.subr.bf16.mxu1 %v4932_v17 }
 0x7da   :  { %1837 = vmatpush1.bf16.msra.mxu1 %v4930_v19 }
 0x7db   :  { %1838 = vmatprep.subr.bf16.mxu1 %v4935_v20 }
 0x7de   :  { %1839 = vmatpush1.bf16.msra.mxu1 %v4933_v21 }
 0x7df   :  { %1840 = vmatprep.subr.bf16.mxu1 %v4938_v22 }
 0x7e2   :  { %1841 = vmatpush1.bf16.msra.mxu1 %v4936_v23  ;;  %v1969_v23 = vld [vmem:[#allocation6] sm:$0x1] }
 0x7e3   :  { %1842 = vmatprep.subr.bf16.mxu1 %v4941_v25 }
 0x7e6   :  { %1843 = vmatpush1.bf16.msra.mxu1 %v4939_v26  ;;  %v1990_v26 = vld [vmem:[#allocation7] sm:$0x1] }
 0x7e7   :  { %1844 = vmatprep.subr.bf16.mxu1 %v4944_v27  ;;  %v2083_v27 = vmax.f32 %v5993_v24, 0.0  ;;  %v4960_v24 = vld [vmem:[%s6616_s13] sm:$0x3f]  }
 0x7ea   :  { %1845 = vmatpush1.bf16.msra.mxu1 %v4942_v28 }
 0x7eb   :  { %1846 = vmatprep.subr.bf16.mxu1 %v4947_v29 }
 0x7ee   :  { %1847 = vmatpush1.bf16.msra.mxu1 %v4945_v11  ;;  %v2087_v11 = vpack.c.bf16 %v2083_v27, %v2083_v27 }
 0x7ef   :  { %1848 = vmatprep.subr.bf16.mxu1 %v4950_v32 }
 0x7f2   :  { %1849 = vmatpush1.bf16.msra.mxu1 %v4948_v33 }
 0x7f3   :  { %1850 = vmatprep.subr.bf16.mxu1 %v4953_v34  ;;  %v2097_v34 = vsel %vm1236_vm7, %v2087_v11, 0  ;;  %v5010_v11 = vld [vmem:[%s6618_s15 + $0x100] ss:$8 sps:$4 sm:$0xff]  }
 0x7f6   :  { %1851 = vmatpush1.bf16.msra.mxu1 %v4951_v35  ;;  %v4962_v35 = vld [vmem:[%s6618_s15] ss:$8 sps:$4 sm:$0xff]  }
 0x7f7   :  { %1852 = vmatprep.subr.bf16.mxu1 %v4956_v36  ;;  %v4964_v36 = vld [vmem:[%s6618_s15 + $0x4] ss:$8 sps:$4 sm:$0xff]  }
 0x7fa   :  { %1853 = vmatpush1.bf16.msra.mxu1 %v4954_v37  ;;  %v4967_v37 = vld [vmem:[%s6618_s15 + $0x14] ss:$8 sps:$4 sm:$0xff]  }
 0x7fb   :  { %1854 = vmatprep.subr.bf16.mxu1 %v4959_v38  ;;  %v4965_v38 = vld [vmem:[%s6618_s15 + $0x10] ss:$8 sps:$4 sm:$0xff]  }
 0x7fe   :  { %1855 = vmatpush1.bf16.msra.mxu1 %v4957_v39  ;;  %v4970_v39 = vld [vmem:[%s6618_s15 + $0x24] ss:$8 sps:$4 sm:$0xff]  }
 0x7ff   :  { %2783 = vmatprep.subr.bf16.mxu1 %v4964_v36  ;;  %v5013_v36 = vld [vmem:[%s6618_s15 + $0x110] ss:$8 sps:$4 sm:$0xff]  }
 0x8a4   :  { %v1668_v40 = vpop.f32.mrb[24].mxu1 }
 0x8a5   :  { %v1674_v42 = vpack.c.bf16 %v1668_v40, %v1668_v40  ;;  %v4613_v43 = vpop.f32.mrb[25].mxu1  ;;  %v4968_v40 = vld [vmem:[%s6618_s15 + $0x20] ss:$8 sps:$4 sm:$0xff]  }
 0x8a6   :  { %v1671_v46 = vpop.f32.mrb[26].mxu1  ;;  %v4971_v43 = vld [vmem:[%s6618_s15 + $0x30] ss:$8 sps:$4 sm:$0xff]  }
 0x8a7   :  { %v1679_v49 = vrot.slane %v1674_v42, 2  ;;  %v4614_v50 = vpop.f32.mrb[27].mxu1  ;;  %v1676_v52 = vrot.slane %v1674_v42, 1  ;;  %v4976_v46 = vld [vmem:[%s6618_s15 + $0x44] ss:$8 sps:$4 sm:$0xff]  }
 0x8a8   :  { %v4979_v50 = vld [vmem:[%s6618_s15 + $0x54] ss:$8 sps:$4 sm:$0xff]  }
 0x8a9   :  { %1677 = vrot.lane.b32.xlu0 %v1676_v52, %s5454_s17  ;;  %4131 = vmatprep.mubr.msk.bf16.mxu1 %vm1680_vm10, %v1679_v49  ;;  %v4974_v49 = vld [vmem:[%s6618_s15 + $0x40] ss:$8 sps:$4 sm:$0xff]   ;;  %v4977_v52 = vld [vmem:[%s6618_s15 + $0x50] ss:$8 sps:$4 sm:$0xff]  }
 0x91b   :  { %v1678_v53 = vpop.permute.xlu0 %1677 }
 0x91c   :  { %v1683_v55 = vsel %vm1680_vm10, %v1674_v42, %v1678_v53  ;;  %v4973_v42 = vld [vmem:[%s6618_s15 + $0x34] ss:$8 sps:$4 sm:$0xff]   ;;  %v4982_v53 = vld [vmem:[%s6618_s15 + $0x64] ss:$8 sps:$4 sm:$0xff]  }
 0x91d   :  { %1865 = vmatmul.mubr.bf16.vlgmr.msra.gmra.mrb[28].mxu1 %v1683_v55  ;;  %v4980_v55 = vld [vmem:[%s6618_s15 + $0x60] ss:$8 sps:$4 sm:$0xff]  }
 0x91e   :  { %2784 = vmatpush1.bf16.msra.mxu1 %v4962_v35  ;;  %v2926_v35 = vld [vmem:[%s6627_s24 + $0x10] sm:$0xff] }
 0x91f   :  { %2785 = vmatprep.subr.bf16.mxu1 %v4967_v37 }
 0x922   :  { %2786 = vmatpush1.bf16.msra.mxu1 %v4965_v38  ;;  %v2927_v38 = vld [vmem:[%s6627_s24 + $0x18] sm:$0xff] }
 0x923   :  { %2787 = vmatprep.subr.bf16.mxu1 %v4970_v39  ;;  %v5018_v39 = vld [vmem:[%s6618_s15 + $0x124] ss:$8 sps:$4 sm:$0xff]  }
 0x926   :  { %2788 = vmatpush1.bf16.msra.mxu1 %v4968_v40  ;;  %v4779_v40 = vpack.c.bf16 %v2927_v38, %v2926_v35  ;;  %v5085_v35 = vld [vmem:[%s6618_s15 + $0x290] ss:$8 sps:$4 sm:$0xff]   ;;  %v5093_v38 = vld [vmem:[%s6618_s15 + $0x2b4] ss:$8 sps:$4 sm:$0xff]  }
 0x927   :  { %2789 = vmatprep.subr.bf16.mxu1 %v4973_v42  ;;  %v2928_v42 = vld [vmem:[%s6627_s24 + $0x20] sm:$0xff] }
 0x92a   :  { %2790 = vmatpush1.bf16.msra.mxu1 %v4971_v43  ;;  %v2929_v43 = vld [vmem:[%s6627_s24 + $0x28] sm:$0xff] }
 0x92b   :  { %2791 = vmatprep.subr.bf16.mxu1 %v4976_v46  ;;  %v5016_v46 = vld [vmem:[%s6618_s15 + $0x120] ss:$8 sps:$4 sm:$0xff]  }
 0x92e   :  { %2792 = vmatpush1.bf16.msra.mxu1 %v4974_v49  ;;  %v5021_v49 = vld [vmem:[%s6618_s15 + $0x134] ss:$8 sps:$4 sm:$0xff]  }
 0x92f   :  { %2793 = vmatprep.subr.bf16.mxu1 %v4979_v50  ;;  %v4782_v50 = vpack.c.bf16 %v2929_v43, %v2928_v42  ;;  %v5094_v42 = vld [vmem:[%s6618_s15 + $0x2c0] ss:$8 sps:$4 sm:$0xff]   ;;  %v5099_v43 = vld [vmem:[%s6618_s15 + $0x2d4] ss:$8 sps:$4 sm:$0xff]  }
 0x932   :  { %2794 = vmatpush1.bf16.msra.mxu1 %v4977_v52  ;;  %v5019_v52 = vld [vmem:[%s6618_s15 + $0x130] ss:$8 sps:$4 sm:$0xff]  }
 0x933   :  { %2795 = vmatprep.subr.bf16.mxu1 %v4982_v53  ;;  %v5024_v53 = vld [vmem:[%s6618_s15 + $0x144] ss:$8 sps:$4 sm:$0xff]  }
 0x936   :  { %2796 = vmatpush1.bf16.msra.mxu1 %v4980_v55  ;;  %v5022_v55 = vld [vmem:[%s6618_s15 + $0x140] ss:$8 sps:$4 sm:$0xff]  }
 0x9f0   :  { %v1866_v56 = vpop.f32.mrb[28].mxu1 }
 0x9f1   :  { %v1868_v58 = vpop.f32.mrb[29].mxu1 }
 0x9f2   :  { %v1874_v59 = vrot.slane %v1868_v58, 6  ;;  %v1870_v62 = vpop.f32.mrb[30].mxu1  ;;  %v4983_v58 = vld [vmem:[%s6618_s15 + $0x70] ss:$8 sps:$4 sm:$0xff]  }
 0x9f3   :  { %v1871_v0 = vpop.f32.mrb[31].mxu1  ;;  %v4986_v62 = vld [vmem:[%s6618_s15 + $0x80] ss:$8 sps:$4 sm:$0xff]  }
 0x9f4   :  { %v6157_v1 = vsel %vm1236_vm7, %v1866_v56, %v1874_v59  ;;  %v4985_v56 = vld [vmem:[%s6618_s15 + $0x74] ss:$8 sps:$4 sm:$0xff]   ;;  %v4988_v59 = vld [vmem:[%s6618_s15 + $0x84] ss:$8 sps:$4 sm:$0xff]  }
 0x9f5   :  { %v1877_v2 = vsel %vm613_vm3, %v6157_v1, 0.0  ;;  %v1884_v3 = vmul.f32 %v6157_v1, %v6157_v1  ;;  %2797 = vmatprep.subr.bf16.mxu1 %v4985_v56  ;;  %v4991_v0 = vld [vmem:[%s6618_s15 + $0x94] ss:$8 sps:$4 sm:$0xff]  }
 0x9f6   :  { %v1878_v41 = vrot.slane %v1877_v2, 4  ;;  %2798 = vmatpush1.bf16.msra.mxu1 %v4983_v58  ;;  %v5027_v56 = vld [vmem:[%s6618_s15 + $0x154] ss:$8 sps:$4 sm:$0xff]   ;;  %v5025_v58 = vld [vmem:[%s6618_s15 + $0x150] ss:$8 sps:$4 sm:$0xff]  }
 0x9f7   :  { %v1885_v44 = vsel %vm613_vm3, %v1884_v3, 0.0  ;;  %2799 = vmatprep.subr.bf16.mxu1 %v4988_v59  ;;  %v4994_v3 = vld [vmem:[%s6618_s15 + $0xa4] ss:$8 sps:$4 sm:$0xff]  }
 0x9f8   :  { %v1879_v48 = vadd.f32 %v1878_v41, %v1877_v2  ;;  %v1886_v51 = vrot.slane %v1885_v44, 4  ;;  %v4989_v2 = vld [vmem:[%s6618_s15 + $0x90] ss:$8 sps:$4 sm:$0xff]   ;;  %v4992_v41 = vld [vmem:[%s6618_s15 + $0xa0] ss:$8 sps:$4 sm:$0xff]  }
 0x9f9   :  { %v5030_v59 = vld [vmem:[%s6618_s15 + $0x164] ss:$8 sps:$4 sm:$0xff]  }
 0x9fa   :  { %v1880_v5 = vrot.slane %v1879_v48, 2  ;;  %v1887_v54 = vadd.f32 %v1886_v51, %v1885_v44  ;;  %2800 = vmatpush1.bf16.msra.mxu1 %v4986_v62  ;;  %v4997_v44 = vld [vmem:[%s6618_s15 + $0xb4] ss:$8 sps:$4 sm:$0xff]   ;;  %v4998_v51 = vld [vmem:[%s6618_s15 + $0xc0] ss:$8 sps:$4 sm:$0xff]  }
 0x9fb   :  { %2801 = vmatprep.subr.bf16.mxu1 %v4991_v0  ;;  %v5028_v62 = vld [vmem:[%s6618_s15 + $0x160] ss:$8 sps:$4 sm:$0xff]   ;;  %v5033_v0 = vld [vmem:[%s6618_s15 + $0x174] ss:$8 sps:$4 sm:$0xff]  }
 0x9fc   :  { %v1881_v6 = vadd.f32 %v1880_v5, %v1879_v48  ;;  %v1888_v7 = vrot.slane %v1887_v54, 2  ;;  %v4995_v48 = vld [vmem:[%s6618_s15 + $0xb0] ss:$8 sps:$4 sm:$0xff]   ;;  %v5000_v5 = vld [vmem:[%s6618_s15 + $0xc4] ss:$8 sps:$4 sm:$0xff]  }
 0x9fe   :  { %v1882_v8 = vrot.slane %v1881_v6, 1  ;;  %v1889_v57 = vadd.f32 %v1888_v7, %v1887_v54  ;;  %2802 = vmatpush1.bf16.msra.mxu1 %v4989_v2  ;;  %v5001_v54 = vld [vmem:[%s6618_s15 + $0xd0] ss:$8 sps:$4 sm:$0xff]   ;;  %v5006_v7 = vld [vmem:[%s6618_s15 + $0xe4] ss:$8 sps:$4 sm:$0xff]  }
 0x9ff   :  { %2803 = vmatprep.subr.bf16.mxu1 %v4994_v3  ;;  %v5031_v2 = vld [vmem:[%s6618_s15 + $0x170] ss:$8 sps:$4 sm:$0xff]   ;;  %v5036_v3 = vld [vmem:[%s6618_s15 + $0x184] ss:$8 sps:$4 sm:$0xff]  }
 0xa00   :  { %v1890_v9 = vrot.slane %v1889_v57, 1  ;;  %v1883_v10 = vadd.f32 %v1882_v8, %v1881_v6  ;;  %v5003_v6 = vld [vmem:[%s6618_s15 + $0xd4] ss:$8 sps:$4 sm:$0xff]   ;;  %v5004_v8 = vld [vmem:[%s6618_s15 + $0xe0] ss:$8 sps:$4 sm:$0xff]  }
 0xa02   :  { %v1891_v12 = vadd.f32 %v1890_v9, %v1889_v57  ;;  %2804 = vmatpush1.bf16.msra.mxu1 %v4992_v41  ;;  %v5034_v41 = vld [vmem:[%s6618_s15 + $0x180] ss:$8 sps:$4 sm:$0xff]  }
 0xa03   :  { %2805 = vmatprep.subr.bf16.mxu1 %v4997_v44  ;;  %v5039_v44 = vld [vmem:[%s6618_s15 + $0x194] ss:$8 sps:$4 sm:$0xff]  }
 0xa04   :  { %v1892_v60 = vsel %vm1017_vm5, %v1883_v10, %v1891_v12 }
 0xa05   :  { %4648 = vmatmul.mubr.f32.vlgmr.msra.gmra.mrb[16].mxu0 %v1892_v60 }
 0xa06   :  { %4774 = vmatpush3.bf16.msra.mxu0 %v5928_v31  ;;  %4654 = vmatprep.mubr.msk.f32.mxu0 %vm5463_vm1, %v5462_v45 }
 0xa07   :  { %4657 = vmatprep.subr.bf16.mxu0 %v5462_v45  ;;  %2806 = vmatpush1.bf16.msra.mxu1 %v4995_v48  ;;  %v5037_v48 = vld [vmem:[%s6618_s15 + $0x190] ss:$8 sps:$4 sm:$0xff]  }
 0xa08   :  { %2807 = vmatprep.subr.bf16.mxu1 %v5000_v5  ;;  %v5040_v5 = vld [vmem:[%s6618_s15 + $0x1a0] ss:$8 sps:$4 sm:$0xff]  }
 0xa0b   :  { %2808 = vmatpush1.bf16.msra.mxu1 %v4998_v51  ;;  %v5042_v51 = vld [vmem:[%s6618_s15 + $0x1a4] ss:$8 sps:$4 sm:$0xff]  }
 0xa0c   :  { %2809 = vmatprep.subr.bf16.mxu1 %v5003_v6  ;;  %v5043_v6 = vld [vmem:[%s6618_s15 + $0x1b0] ss:$8 sps:$4 sm:$0xff]  }
 0xa0f   :  { %2810 = vmatpush1.bf16.msra.mxu1 %v5001_v54  ;;  %v5045_v54 = vld [vmem:[%s6618_s15 + $0x1b4] ss:$8 sps:$4 sm:$0xff]  }
 0xa10   :  { %2811 = vmatprep.subr.bf16.mxu1 %v5006_v7  ;;  %v5048_v7 = vld [vmem:[%s6618_s15 + $0x1c4] ss:$8 sps:$4 sm:$0xff]  }
 0xa13   :  { %2812 = vmatpush1.bf16.msra.mxu1 %v5004_v8  ;;  %v5046_v8 = vld [vmem:[%s6618_s15 + $0x1c0] ss:$8 sps:$4 sm:$0xff]  }
 0xad8   :  { %v1959_v63 = vpop.f32.mrb[16].mxu0 }
 0xad9   :  { %v1963_v13 = vmul.f32 0.03125, %v1959_v63  ;;  %v4649_v14 = vpop.f32.mrb[17].mxu0 }
 0xadb   :  { %v1964_v15 = vmul.f32 %v1963_v13, %v1963_v13 }
 0xadd   :  { %v1966_v16 = vrot.slane %v1964_v15, 7 }
 0xadf   :  { %v1968_v17 = vsub.f32 %v1963_v13, %v1966_v16  ;;  %v4961_v16 = vld [vmem:[%s6617_s14] sm:$0x3f]  }
 0xae1   :  { %v1970_v19 = vadd.f32 1e-05, %v1968_v17 }
 0xae3   :  { %5256 = vrsqrt.f32 %v1970_v19 }
 0xaed   :  { %v5257_v20 = vpop.eup %5256 }
 0xaee   :  { %v1979_v21 = vrot.slane %v5257_v20, %v5932_v47 }
 0xaf0   :  { %v1980_v22 = vcombine.high %v1979_v21, %v1979_v21 }
 0xaf2   :  { %v1987_v31 = vrot.slane %v1980_v22, %v5932_v47  ;;  %v5009_v22 = vld [vmem:[%s6618_s15 + $0xf4] ss:$8 sps:$4 sm:$0xff]  }
 0xaf3   :  { %2813 = vmatprep.subr.bf16.mxu1 %v5009_v22  ;;  %v5069_v22 = vld [vmem:[%s6618_s15 + $0x234] ss:$8 sps:$4 sm:$0xff]  }
 0xaf4   :  { %v1989_v25 = vmul.f32 %v1987_v31, %v1969_v23  ;;  %v5007_v23 = vld [vmem:[%s6618_s15 + $0xf0] ss:$8 sps:$4 sm:$0xff]   ;;  %v5012_v31 = vld [vmem:[%s6618_s15 + $0x104] ss:$8 sps:$4 sm:$0xff]  }
 0xaf5   :  { %2814 = vmatpush1.bf16.msra.mxu1 %v5007_v23  ;;  %v5067_v23 = vld [vmem:[%s6618_s15 + $0x230] ss:$8 sps:$4 sm:$0xff]  }
 0xaf6   :  { %v1991_v28 = vmul.f32 %v1989_v25, %v1963_v13  ;;  %2824 = vmatprep.subr.bf16.mxu1 %v5012_v31  ;;  %v5072_v31 = vld [vmem:[%s6618_s15 + $0x244] ss:$8 sps:$4 sm:$0xff]  }
 0xaf8   :  { %v1992_v29 = vsub.f32 %v1990_v26, %v1991_v28 }
 0xafa   :  { %v1997_v32 = vrot.slane %v1992_v29, %v5939_v61 }
 0xafc   :  { %v1999_v33 = vsel %vm1017_vm5, %v1989_v25, %v1997_v32  ;;  %v5015_v32 = vld [vmem:[%s6618_s15 + $0x114] ss:$8 sps:$4 sm:$0xff]  }
 0xafd   :  { %4655 = vmatmul.mubr.msk.f32.vlgmr.msra.gmra.mrb[18].mxu0 %vm198_vm0, %v1999_v33 }
 0xafe   :  { %4658 = vmatpush3.bf16.msra.mxu0 %v2097_v34  ;;  %4659 = vmatprep.mubr.msk.bf16.mxu0 %vm5463_vm1, %v5462_v45  ;;  %v2924_v34 = vld [vmem:[%s6627_s24] sm:$0xff] }
 0xaff   :  { %4663 = vmatprep.subr.bf16.mxu0 %v5462_v45 }
 0xb01   :  { %4660 = vmatmul.mubr.msk.bf16.vlgmr.msra.gmra.mrb[20].mxu0 %vm1232_vm8, %v4960_v24  ;;  %v2925_v24 = vld [vmem:[%s6627_s24 + $0x8] sm:$0xff] }
 0xb02   :  { %4665 = vmatprep.mubr.msk.bf16.mxu0 %vm5463_vm1, %v5462_v45  ;;  %v4776_v37 = vpack.c.bf16 %v2925_v24, %v2924_v34  ;;  %v5082_v34 = vld [vmem:[%s6618_s15 + $0x280] ss:$8 sps:$4 sm:$0xff]   ;;  %v5087_v24 = vld [vmem:[%s6618_s15 + $0x294] ss:$8 sps:$4 sm:$0xff]  }
 0xbd0   :  { %v2069_v57 = vpop.f32.mrb[18].mxu0 }
 0xbd1   :  { %v2076_v9 = vrot.slane %v2069_v57, %v5939_v61  ;;  %v4656_v10 = vpop.f32.mrb[19].mxu0  ;;  %v2081_v60 = vrot.slane %v2069_v57, %v5988_v18  ;;  %v5051_v57 = vld [vmem:[%s6618_s15 + $0x1d4] ss:$8 sps:$4 sm:$0xff]  }
 0xbd2   :  { %v5054_v10 = vld [vmem:[%s6618_s15 + $0x1e4] ss:$8 sps:$4 sm:$0xff]  }
 0xbd3   :  { %v2077_v12 = vmul.f32 %v2076_v9, %v6157_v1  ;;  %v5049_v9 = vld [vmem:[%s6618_s15 + $0x1d0] ss:$8 sps:$4 sm:$0xff]  }
 0xbd4   :  { %v2133_v1 = vpop.f32.mrb[20].mxu0 }
 0xbd5   :  { %v2082_v63 = vadd.f32 %v2081_v60, %v2077_v12  ;;  %v4661_v17 = vpop.f32.mrb[21].mxu0  ;;  %v5052_v12 = vld [vmem:[%s6618_s15 + $0x1e0] ss:$8 sps:$4 sm:$0xff]   ;;  %v5057_v60 = vld [vmem:[%s6618_s15 + $0x1f4] ss:$8 sps:$4 sm:$0xff]  }
 0xbd6   :  { %v2136_v19 = vpop.f32.mrb[22].mxu0  ;;  %v5061_v17 = vld [vmem:[%s6618_s15 + $0x210] ss:$8 sps:$4 sm:$0xff]  }
 0xbd7   :  { %v2084_v13 = vmax.f32 %v2082_v63, 0.0  ;;  %v6286_v20 = vpack.c.bf16 %v2136_v19, %v2133_v1  ;;  %v4662_v21 = vpop.f32.mrb[23].mxu0  ;;  %v5055_v63 = vld [vmem:[%s6618_s15 + $0x1f0] ss:$8 sps:$4 sm:$0xff]   ;;  %v5066_v19 = vld [vmem:[%s6618_s15 + $0x224] ss:$8 sps:$4 sm:$0xff]  }
 0xbd8   :  { %v5064_v21 = vld [vmem:[%s6618_s15 + $0x220] ss:$8 sps:$4 sm:$0xff]  }
 0xbd9   :  { %v2143_v14 = vpack.c.bf16 %v2084_v13, %v2084_v13  ;;  %v5060_v13 = vld [vmem:[%s6618_s15 + $0x204] ss:$8 sps:$4 sm:$0xff]  }
 0xbdb   :  { %v2153_v15 = vsel %vm1236_vm7, %v2143_v14, 0  ;;  %v5058_v14 = vld [vmem:[%s6618_s15 + $0x200] ss:$8 sps:$4 sm:$0xff]  }
 0xbdc   :  { %4664 = vmatpush3.bf16.msra.mxu0 %v2153_v15  ;;  %v2198_v15 = vrot.slane %v6286_v20, 2 }
 0xbdd   :  { %4775 = vmatprep.subr.bf16.mxu0 %v5464_v30 }
 0xbdf   :  { %4666 = vmatmul.mubr.msk.bf16.vlgmr.msra.gmra.mrb[24].mxu0 %vm1232_vm8, %v4961_v16  ;;  %v5063_v16 = vld [vmem:[%s6618_s15 + $0x214] ss:$8 sps:$4 sm:$0xff]  }
 0xbe0   :  { %4701 = vmatprep.mubr.msk.f32.mxu0 %vm5463_vm1, %v5462_v45  ;;  %4777 = vmatpush3.bf16.msra.mxu0 %v4776_v37  ;;  %v5088_v37 = vld [vmem:[%s6618_s15 + $0x2a0] ss:$8 sps:$4 sm:$0xff]  }
 0xbe1   :  { %4778 = vmatprep.subr.bf16.mxu0 %v5464_v30 }
 0xbe4   :  { %4780 = vmatpush3.bf16.msra.mxu0 %v4779_v40  ;;  %v5096_v40 = vld [vmem:[%s6618_s15 + $0x2c4] ss:$8 sps:$4 sm:$0xff]  }
 0xbe5   :  { %4781 = vmatprep.subr.bf16.mxu0 %v5464_v30 }
 0xbe8   :  { %4783 = vmatpush3.bf16.msra.mxu0 %v4782_v50  ;;  %v5100_v50 = vld [vmem:[%s6618_s15 + $0x2e0] ss:$8 sps:$4 sm:$0xff]  }
 0xbe9   :  { %4784 = vmatprep.subr.bf16.mxu0 %v5464_v30 }
 0xcb2   :  { %v2189_v25 = vpop.f32.mrb[24].mxu0 }
 0xcb3   :  { %v4667_v26 = vpop.f32.mrb[25].mxu0 }
 0xcb4   :  { %v2192_v27 = vpop.f32.mrb[26].mxu0  ;;  %v5075_v26 = vld [vmem:[%s6618_s15 + $0x254] ss:$8 sps:$4 sm:$0xff]  }
 0xcb5   :  { %v6297_v28 = vpack.c.bf16 %v2192_v27, %v2189_v25  ;;  %v4668_v29 = vpop.f32.mrb[27].mxu0  ;;  %v5070_v25 = vld [vmem:[%s6618_s15 + $0x240] ss:$8 sps:$4 sm:$0xff]   ;;  %v5073_v27 = vld [vmem:[%s6618_s15 + $0x250] ss:$8 sps:$4 sm:$0xff]  }
 0xcb6   :  { %v5076_v29 = vld [vmem:[%s6618_s15 + $0x260] ss:$8 sps:$4 sm:$0xff]  }
 0xcb7   :  { %2815 = vmatprep.mubr.bf16.mxu1 %v6297_v28  ;;  %v2201_v33 = vrot.slane %v6297_v28, 2  ;;  %v2205_v1 = vrot.slane %v6297_v28, 4  ;;  %v5078_v28 = vld [vmem:[%s6618_s15 + $0x264] ss:$8 sps:$4 sm:$0xff]  }
 0xcb8   :  { %2816 = vmatmul.mubr.bf16.vlgmr.msra.gmra.mrb[32].mxu1 %v6286_v20 }
 0xcb9   :  { %2825 = vmatpush1.bf16.msra.mxu1 %v5010_v11  ;;  %2856 = vmatprep.mubr.bf16.mxu1 %v2201_v33  ;;  %v5081_v11 = vld [vmem:[%s6618_s15 + $0x274] ss:$8 sps:$4 sm:$0xff]   ;;  %v5084_v33 = vld [vmem:[%s6618_s15 + $0x284] ss:$8 sps:$4 sm:$0xff]  }
 0xcba   :  { %2826 = vmatprep.subr.bf16.mxu1 %v5015_v32  ;;  %v5079_v32 = vld [vmem:[%s6618_s15 + $0x270] ss:$8 sps:$4 sm:$0xff]  }
 0xcbd   :  { %2827 = vmatpush1.bf16.msra.mxu1 %v5013_v36  ;;  %v5090_v36 = vld [vmem:[%s6618_s15 + $0x2a4] ss:$8 sps:$4 sm:$0xff]  }
 0xcbe   :  { %2828 = vmatprep.subr.bf16.mxu1 %v5018_v39  ;;  %v5091_v39 = vld [vmem:[%s6618_s15 + $0x2b0] ss:$8 sps:$4 sm:$0xff]  }
 0xcc1   :  { %2829 = vmatpush1.bf16.msra.mxu1 %v5016_v46  ;;  %v5097_v46 = vld [vmem:[%s6618_s15 + $0x2d0] ss:$8 sps:$4 sm:$0xff]  }
 0xcc2   :  { %2830 = vmatprep.subr.bf16.mxu1 %v5021_v49  ;;  %v5102_v49 = vld [vmem:[%s6618_s15 + $0x2e4] ss:$8 sps:$4 sm:$0xff]  }
 0xcc5   :  { %2831 = vmatpush1.bf16.msra.mxu1 %v5019_v52  ;;  %v5105_v52 = vld [vmem:[%s6618_s15 + $0x2f4] ss:$8 sps:$4 sm:$0xff]  }
 0xcc6   :  { %2832 = vmatprep.subr.bf16.mxu1 %v5024_v53  ;;  %v5103_v53 = vld [vmem:[%s6618_s15 + $0x2f0] ss:$8 sps:$4 sm:$0xff]  }
 0xcc9   :  { %2833 = vmatpush1.bf16.msra.mxu1 %v5022_v55  ;;  %v2203_v55 = vrot.slane %v6286_v20, 4  ;;  %v2933_v20 = vld [vmem:[%s6627_s24 + $0x48] sm:$0xff] }
 0xcca   :  { %2834 = vmatprep.subr.bf16.mxu1 %v5027_v56  ;;  %v2930_v56 = vld [vmem:[%s6627_s24 + $0x30] sm:$0xff] }
 0xccd   :  { %2835 = vmatpush1.bf16.msra.mxu1 %v5025_v58  ;;  %v2931_v58 = vld [vmem:[%s6627_s24 + $0x38] sm:$0xff] }
 0xcce   :  { %2836 = vmatprep.subr.bf16.mxu1 %v5030_v59  ;;  %v4785_v59 = vpack.c.bf16 %v2931_v58, %v2930_v56 }
 0xcd0   :  { %4786 = vmatpush3.bf16.msra.mxu0 %v4785_v59 }
 0xcd1   :  { %2837 = vmatpush1.bf16.msra.mxu1 %v5028_v62  ;;  %4787 = vmatprep.subr.bf16.mxu0 %v5464_v30  ;;  %v2932_v62 = vld [vmem:[%s6627_s24 + $0x40] sm:$0xff] }
 0xcd2   :  { %2838 = vmatprep.subr.bf16.mxu1 %v5033_v0  ;;  %v4788_v0 = vpack.c.bf16 %v2933_v20, %v2932_v62 }
 0xcd4   :  { %4789 = vmatpush3.bf16.msra.mxu0 %v4788_v0 }
 0xcd5   :  { %2839 = vmatpush1.bf16.msra.mxu1 %v5031_v2  ;;  %4790 = vmatprep.subr.bf16.mxu0 %v5464_v30  ;;  %v2934_v2 = vld [vmem:[%s6627_s24 + $0x50] sm:$0xff] }
 0xcd6   :  { %2840 = vmatprep.subr.bf16.mxu1 %v5036_v3  ;;  %v2935_v3 = vld [vmem:[%s6627_s24 + $0x58] sm:$0xff] }
 0xcd9   :  { %2841 = vmatpush1.bf16.msra.mxu1 %v5034_v41  ;;  %v4791_v41 = vpack.c.bf16 %v2935_v3, %v2934_v2  ;;  %v5112_v2 = vld [vmem:[#allocation12 + $0x4] ss:$8 sps:$4 sm:$0xff]  }
 0xcda   :  { %2842 = vmatprep.subr.bf16.mxu1 %v5039_v44  ;;  %v2936_v44 = vld [vmem:[%s6627_s24 + $0x60] sm:$0xff] }
 0xcdb   :  { %4792 = vmatpush3.bf16.msra.mxu0 %v4791_v41  ;;  %v5109_v41 = vld [vmem:[%s6622_s19 + $0x8] ss:$0 sps:$4 sm:$0xff]  }
 0xcdc   :  { %4793 = vmatprep.subr.bf16.mxu0 %v5464_v30 }
 0xcdd   :  { %2843 = vmatpush1.bf16.msra.mxu1 %v5037_v48  ;;  %v2937_v48 = vld [vmem:[%s6627_s24 + $0x68] sm:$0xff] }
 0xcde   :  { %2844 = vmatprep.subr.bf16.mxu1 %v5042_v51  ;;  %v2938_v51 = vld [vmem:[%s6627_s24 + $0x70] sm:$0xff] }
 0xce1   :  { %2845 = vmatpush1.bf16.msra.mxu1 %v5040_v5  ;;  %v4794_v5 = vpack.c.bf16 %v2937_v48, %v2936_v44  ;;  %v5110_v44 = vld [vmem:[#allocation12] ss:$8 sps:$4 sm:$0xff]   ;;  %v5118_v48 = vld [vmem:[#allocation12 + $0x24] ss:$8 sps:$4 sm:$0xff]  }
 0xce2   :  { %2846 = vmatprep.subr.bf16.mxu1 %v5045_v54  ;;  %v2939_v54 = vld [vmem:[%s6627_s24 + $0x78] sm:$0xff] }
 0xce3   :  { %4795 = vmatpush3.bf16.msra.mxu0 %v4794_v5  ;;  %v5121_v5 = vld [vmem:[#allocation12 + $0x34] ss:$8 sps:$4 sm:$0xff]  }
 0xce4   :  { %4796 = vmatprep.subr.bf16.mxu0 %v5464_v30 }
 0xce5   :  { %2847 = vmatpush1.bf16.msra.mxu1 %v5043_v6  ;;  %v4797_v6 = vpack.c.bf16 %v2939_v54, %v2938_v51  ;;  %v5116_v51 = vld [vmem:[#allocation12 + $0x20] ss:$8 sps:$4 sm:$0xff]   ;;  %v5119_v54 = vld [vmem:[#allocation12 + $0x30] ss:$8 sps:$4 sm:$0xff]  }
 0xce6   :  { %2848 = vmatprep.subr.bf16.mxu1 %v5048_v7 }
 0xce7   :  { %4798 = vmatpush3.bf16.msra.mxu0 %v4797_v6  ;;  %v5124_v6 = vld [vmem:[#allocation12 + $0x44] ss:$8 sps:$4 sm:$0xff]  }
 0xce8   :  { %4704 = vmatprep.subr.mxu0 %v5462_v45 }
 0xce9   :  { %2849 = vmatpush1.bf16.msra.mxu1 %v5046_v8 }
 0xcea   :  { %2850 = vmatprep.subr.bf16.mxu1 %v5051_v57 }
 0xced   :  { %2851 = vmatpush1.bf16.msra.mxu1 %v5049_v9 }
 0xcee   :  { %2852 = vmatprep.subr.bf16.mxu1 %v5054_v10 }
 0xcf1   :  { %2853 = vmatpush1.bf16.msra.mxu1 %v5052_v12 }
 0xcf2   :  { %2854 = vmatprep.subr.bf16.mxu1 %v5057_v60 }
 0xcf5   :  { %2855 = vmatpush1.bf16.msra.mxu1 %v5055_v63 }
 0xcf6   :  { %2865 = vmatprep.subr.bf16.mxu1 %v5060_v13 }
 0xcf8   :  { %2857 = vmatmul.mubr.bf16.vlgmr.msra.gmra.mrb[32].mxu1 %v2198_v15 }
 0xcf9   :  { %2866 = vmatpush1.bf16.msra.mxu1 %v5058_v14  ;;  %2897 = vmatprep.mubr.bf16.mxu1 %v2205_v1 }
 0xcfa   :  { %2867 = vmatprep.subr.bf16.mxu1 %v5063_v16 }
 0xcfd   :  { %2868 = vmatpush1.bf16.msra.mxu1 %v5061_v17 }
 0xcfe   :  { %2869 = vmatprep.subr.bf16.mxu1 %v5066_v19 }
 0xd01   :  { %2870 = vmatpush1.bf16.msra.mxu1 %v5064_v21 }
 0xd02   :  { %2871 = vmatprep.subr.bf16.mxu1 %v5069_v22  ;;  %v3131_v22 = vmax.f32 %v5819_v4, 0.0 }
 0xd05   :  { %2872 = vmatpush1.bf16.msra.mxu1 %v5067_v23 }
 0xd06   :  { %2873 = vmatprep.subr.bf16.mxu1 %v5072_v31 }
 0xd09   :  { %2874 = vmatpush1.bf16.msra.mxu1 %v5070_v25  ;;  %v3047_v25 = vld [vmem:[%s6628_s25] sm:$0xff] }
 0xd0a   :  { %2875 = vmatprep.subr.bf16.mxu1 %v5075_v26 }
 0xd0d   :  { %2876 = vmatpush1.bf16.msra.mxu1 %v5073_v27  ;;  %v3136_v27 = vpack.c.bf16 %v3131_v22, %v3131_v22  ;;  %v5151_v22 = vld [vmem:[#allocation12 + $0xd4] ss:$8 sps:$4 sm:$0xff]  }
 0xd0e   :  { %2877 = vmatprep.subr.bf16.mxu1 %v5078_v28 }
 0xd11   :  { %2878 = vmatpush1.bf16.msra.mxu1 %v5076_v29 }
 0xd12   :  { %2879 = vmatprep.subr.bf16.mxu1 %v5081_v11 }
 0xd15   :  { %2880 = vmatpush1.bf16.msra.mxu1 %v5079_v32 }
 0xd16   :  { %2881 = vmatprep.subr.bf16.mxu1 %v5084_v33 }
 0xd19   :  { %2882 = vmatpush1.bf16.msra.mxu1 %v5082_v34 }
 0xd1a   :  { %2883 = vmatprep.subr.bf16.mxu1 %v5087_v24 }
 0xd1d   :  { %2884 = vmatpush1.bf16.msra.mxu1 %v5085_v35 }
 0xd1e   :  { %2885 = vmatprep.subr.bf16.mxu1 %v5090_v36 }
 0xd21   :  { %2886 = vmatpush1.bf16.msra.mxu1 %v5088_v37  ;;  %v3016_v37 = vld [vmem:[#allocation9] sm:$0x1] }
 0xd22   :  { %2887 = vmatprep.subr.bf16.mxu1 %v5093_v38 }
 0xd25   :  { %2888 = vmatpush1.bf16.msra.mxu1 %v5091_v39 }
 0xd26   :  { %2889 = vmatprep.subr.bf16.mxu1 %v5096_v40  ;;  %v3037_v40 = vld [vmem:[#allocation10] sm:$0x1] }
 0xd29   :  { %2890 = vmatpush1.bf16.msra.mxu1 %v5094_v42 }
 0xd2a   :  { %2891 = vmatprep.subr.bf16.mxu1 %v5099_v43 }
 0xd2d   :  { %2892 = vmatpush1.bf16.msra.mxu1 %v5097_v46 }
 0xd2e   :  { %2893 = vmatprep.subr.bf16.mxu1 %v5102_v49  ;;  %v3152_v49 = vsel %vm613_vm3, %v3136_v27, 0 }
 0xd31   :  { %2894 = vmatpush1.bf16.msra.mxu1 %v5100_v50  ;;  %v5106_v50 = vld [vmem:[%s6621_s18] sm:$0xff]  }
 0xd32   :  { %2895 = vmatprep.subr.bf16.mxu1 %v5105_v52  ;;  %v5108_v52 = vld [vmem:[%s6622_s19] sm:$0xff]  }
 0xd35   :  { %2896 = vmatpush1.bf16.msra.mxu1 %v5103_v53 }
 0xd38   :  { %2898 = vmatmul.mubr.bf16.vlgmr.msra.gmra.mrb[32].mxu1 %v2203_v55 }
 0xe0b   :  { %v2899_v7 = vpop.f32.mrb[32].mxu1 }
 0xe0c   :  { %v2901_v8 = vpop.f32.mrb[33].mxu1 }
 0xe0d   :  { %v2907_v57 = vrot.slane %v2901_v8, 4  ;;  %v2903_v9 = vpop.f32.mrb[34].mxu1  ;;  %v5127_v8 = vld [vmem:[#allocation12 + $0x54] ss:$8 sps:$4 sm:$0xff]  }
 0xe0e   :  { %v2904_v10 = vpop.f32.mrb[35].mxu1  ;;  %v5130_v9 = vld [vmem:[#allocation12 + $0x64] ss:$8 sps:$4 sm:$0xff]  }
 0xe0f   :  { %v2909_v12 = vsel %vm613_vm3, %v2899_v7, %v2907_v57  ;;  %v5122_v7 = vld [vmem:[#allocation12 + $0x40] ss:$8 sps:$4 sm:$0xff]   ;;  %v5125_v57 = vld [vmem:[#allocation12 + $0x50] ss:$8 sps:$4 sm:$0xff]  }
 0xe10   :  { %v2910_v60 = vrot.slane %v2909_v12, 4  ;;  %v2916_v63 = vmul.f32 %v2909_v12, %v2909_v12  ;;  %v5128_v10 = vld [vmem:[#allocation12 + $0x60] ss:$8 sps:$4 sm:$0xff]  }
 0xe12   :  { %v2911_v13 = vadd.f32 %v2910_v60, %v2909_v12  ;;  %v2917_v14 = vrot.slane %v2916_v63, 4  ;;  %v5131_v60 = vld [vmem:[#allocation12 + $0x70] ss:$8 sps:$4 sm:$0xff]  }
 0xe14   :  { %v2912_v15 = vrot.slane %v2911_v13, 2  ;;  %v2918_v16 = vadd.f32 %v2917_v14, %v2916_v63  ;;  %v5136_v63 = vld [vmem:[#allocation12 + $0x84] ss:$8 sps:$4 sm:$0xff]   ;;  %v5139_v14 = vld [vmem:[#allocation12 + $0x94] ss:$8 sps:$4 sm:$0xff]  }
 0xe16   :  { %v2913_v1 = vadd.f32 %v2912_v15, %v2911_v13  ;;  %v2919_v17 = vrot.slane %v2918_v16, 2  ;;  %v5134_v13 = vld [vmem:[#allocation12 + $0x80] ss:$8 sps:$4 sm:$0xff]   ;;  %v5137_v15 = vld [vmem:[#allocation12 + $0x90] ss:$8 sps:$4 sm:$0xff]  }
 0xe18   :  { %v2914_v19 = vrot.slane %v2913_v1, 1  ;;  %v2920_v30 = vadd.f32 %v2919_v17, %v2918_v16  ;;  %v5142_v16 = vld [vmem:[#allocation12 + $0xa4] ss:$8 sps:$4 sm:$0xff]   ;;  %v5145_v17 = vld [vmem:[#allocation12 + $0xb4] ss:$8 sps:$4 sm:$0xff]  }
 0xe1a   :  { %v2921_v21 = vrot.slane %v2920_v30, 1  ;;  %v2915_v23 = vadd.f32 %v2914_v19, %v2913_v1  ;;  %v5140_v1 = vld [vmem:[#allocation12 + $0xa0] ss:$8 sps:$4 sm:$0xff]   ;;  %v5143_v19 = vld [vmem:[#allocation12 + $0xb0] ss:$8 sps:$4 sm:$0xff]  }
 0xe1c   :  { %v2922_v31 = vadd.f32 %v2921_v21, %v2920_v30  ;;  %v5148_v30 = vld [vmem:[#allocation12 + $0xc4] ss:$8 sps:$4 sm:$0xff]   ;;  %v5146_v21 = vld [vmem:[#allocation12 + $0xc0] ss:$8 sps:$4 sm:$0xff]  }
 0xe1e   :  { %v2923_v26 = vsel %vm1017_vm5, %v2915_v23, %v2922_v31  ;;  %v5149_v23 = vld [vmem:[#allocation12 + $0xd0] ss:$8 sps:$4 sm:$0xff]   ;;  %v5154_v31 = vld [vmem:[#allocation12 + $0xe4] ss:$8 sps:$4 sm:$0xff]  }
 0xe1f   :  { %4702 = vmatmul.mubr.f32.vlgmr.msra.gmra.mrb[28].mxu0 %v2923_v26 }
 0xe20   :  { %4705 = vmatpush3.msra.mxu0 %v3047_v25  ;;  %4706 = vmatprep.mubr.msk.f32.mxu0 %vm5463_vm1, %v5462_v45  ;;  %v5152_v25 = vld [vmem:[#allocation12 + $0xe0] ss:$8 sps:$4 sm:$0xff]  }
 0xe21   :  { %4807 = vmatprep.subr.msk.bf16.mxu0 %vm613_vm3, %v3136_v27 }
 0xef2   :  { %v3006_v28 = vpop.f32.mrb[28].mxu0 }
 0xef3   :  { %v3010_v29 = vmul.f32 0.0078125, %v3006_v28  ;;  %v4703_v11 = vpop.f32.mrb[29].mxu0 }
 0xef5   :  { %v3011_v4 = vmul.f32 %v3010_v29, %v3010_v29 }
 0xef7   :  { %v3013_v32 = vrot.slane %v3011_v4, 7  ;;  %v5157_v4 = vld [vmem:[#allocation12 + $0xf4] ss:$8 sps:$4 sm:$0xff]  }
 0xef9   :  { %v3015_v33 = vsub.f32 %v3010_v29, %v3013_v32  ;;  %v5155_v32 = vld [vmem:[#allocation12 + $0xf0] ss:$8 sps:$4 sm:$0xff]  }
 0xefb   :  { %v3017_v34 = vadd.f32 1e-05, %v3015_v33  ;;  %v5160_v33 = vld [vmem:[#allocation12 + $0x104] ss:$8 sps:$4 sm:$0xff]  }
 0xefd   :  { %5258 = vrsqrt.f32 %v3017_v34 }
 0xf07   :  { %v5259_v24 = vpop.eup %5258 }
 0xf08   :  { %v3026_v35 = vrot.slane %v5259_v24, %v5932_v47 }
 0xf0a   :  { %v3027_v36 = vcombine.high %v3026_v35, %v3026_v35 }
 0xf0c   :  { %v3034_v38 = vrot.slane %v3027_v36, %v5932_v47  ;;  %v5107_v47 = vld [vmem:[%s6621_s18 + $0x8] ss:$0 sps:$4 sm:$0xff]  }
 0xf0e   :  { %v3036_v39 = vmul.f32 %v3034_v38, %v3016_v37  ;;  %v5158_v38 = vld [vmem:[#allocation12 + $0x100] ss:$8 sps:$4 sm:$0xff]  }
 0xf10   :  { %v3038_v45 = vmul.f32 %v3036_v39, %v3010_v29 }
 0xf12   :  { %v3039_v42 = vsub.f32 %v3037_v40, %v3038_v45  ;;  %v5161_v45 = vld [vmem:[#allocation12 + $0x110] ss:$8 sps:$4 sm:$0xff]  }
 0xf14   :  { %v3044_v43 = vrot.slane %v3039_v42, %v5939_v61  ;;  %v5166_v42 = vld [vmem:[#allocation12 + $0x124] ss:$8 sps:$4 sm:$0xff]  }
 0xf16   :  { %v3046_v46 = vsel %vm1017_vm5, %v3036_v39, %v3044_v43  ;;  %v5163_v39 = vld [vmem:[#allocation12 + $0x114] ss:$8 sps:$4 sm:$0xff]   ;;  %v5164_v43 = vld [vmem:[#allocation12 + $0x120] ss:$8 sps:$4 sm:$0xff]  }
 0xf17   :  { %4707 = vmatmul.mubr.msk.f32.vlgmr.msra.gmra.mrb[30].mxu0 %vm609_vm4, %v3046_v46  ;;  %v5169_v46 = vld [vmem:[#allocation12 + $0x134] ss:$8 sps:$4 sm:$0xff]  }
 0xf18   :  { %4710 = vmatpush3.bf16.msra.mxu0 %v3152_v49  ;;  %4711 = vmatprep.mubr.msk.bf16.mxu0 %vm609_vm4, %v5106_v50  ;;  %v5167_v49 = vld [vmem:[#allocation12 + $0x130] ss:$8 sps:$4 sm:$0xff]   ;;  %v5172_v50 = vld [vmem:[#allocation12 + $0x144] ss:$8 sps:$4 sm:$0xff]  }
 0xf1b   :  { %4712 = vmatmul.mubr.msk.bf16.vlgmr.msra.gmra.mrb[32].mxu0 %vm609_vm4, %v5107_v47  ;;  %v5170_v47 = vld [vmem:[#allocation12 + $0x140] ss:$8 sps:$4 sm:$0xff]  }
 0xf1c   :  { %4717 = vmatprep.mubr.msk.bf16.mxu0 %vm609_vm4, %v5108_v52  ;;  %v5175_v52 = vld [vmem:[#allocation12 + $0x154] ss:$8 sps:$4 sm:$0xff]  }
 0xfea   :  { %v3117_v53 = vpop.f32.mrb[30].mxu0 }
 0xfeb   :  { %v3124_v55 = vrot.slane %v3117_v53, %v5939_v61  ;;  %v4708_v56 = vpop.f32.mrb[31].mxu0  ;;  %v3129_v59 = vrot.slane %v3117_v53, %v5988_v18  ;;  %v5115_v61 = vld [vmem:[#allocation12 + $0x14] ss:$8 sps:$4 sm:$0xff]   ;;  %v5113_v18 = vld [vmem:[#allocation12 + $0x10] ss:$8 sps:$4 sm:$0xff]  }
 0xfec   :  { %v5173_v53 = vld [vmem:[#allocation12 + $0x150] ss:$8 sps:$4 sm:$0xff]   ;;  %v5176_v56 = vld [vmem:[#allocation12 + $0x160] ss:$8 sps:$4 sm:$0xff]  }
 0xfed   :  { %v3125_v58 = vmul.f32 %v3124_v55, %v2909_v12  ;;  %v5133_v12 = vld [vmem:[#allocation12 + $0x74] ss:$8 sps:$4 sm:$0xff]   ;;  %v5178_v55 = vld [vmem:[#allocation12 + $0x164] ss:$8 sps:$4 sm:$0xff]  }
 0xfee   :  { %v6585_v26 = vpop.f32.mrb[32].mxu0 }
 0xfef   :  { %v3130_v62 = vadd.f32 %v3129_v59, %v3125_v58  ;;  %v3188_v27 = vpop.f32.mrb[33].mxu0  ;;  %v5181_v58 = vld [vmem:[#allocation12 + $0x174] ss:$8 sps:$4 sm:$0xff]   ;;  %v5179_v59 = vld [vmem:[#allocation12 + $0x170] ss:$8 sps:$4 sm:$0xff]  }
 0xff0   :  { %v4714_v28 = vpop.f32.mrb[34].mxu0 }
 0xff1   :  { %v3132_v20 = vmax.f32 %v3130_v62, 0.0  ;;  %v3191_v29 = vpop.f32.mrb[35].mxu0  ;;  %v5184_v62 = vld [vmem:[#allocation12 + $0x184] ss:$8 sps:$4 sm:$0xff]   ;;  %v5235_v28 = vld [vmem:[#allocation12 + $0x294] ss:$8 sps:$4 sm:$0xff]  }
 0xff2   :  { %v6587_v11 = vpack.c.bf16 %v3191_v29, %v3188_v27  ;;  %v5230_v27 = vld [vmem:[#allocation12 + $0x280] ss:$8 sps:$4 sm:$0xff]   ;;  %v5233_v29 = vld [vmem:[#allocation12 + $0x290] ss:$8 sps:$4 sm:$0xff]  }
 0xff3   :  { %v3207_v0 = vpack.c.bf16 %v3132_v20, %v3132_v20  ;;  %v5182_v20 = vld [vmem:[#allocation12 + $0x180] ss:$8 sps:$4 sm:$0xff]  }
 0xff5   :  { %4808 = vmatprep.subr.msk.bf16.mxu0 %vm613_vm3, %v3207_v0  ;;  %v3223_v3 = vsel %vm613_vm3, %v3207_v0, 0  ;;  %v5187_v0 = vld [vmem:[#allocation12 + $0x194] ss:$8 sps:$4 sm:$0xff]  }
 0xff6   :  { %4716 = vmatpush3.bf16.msra.mxu0 %v3223_v3  ;;  %v5190_v3 = vld [vmem:[#allocation12 + $0x1a4] ss:$8 sps:$4 sm:$0xff]  }
 0xff7   :  { %3857 = vmatprep.subr.bf16.mxu0 %v5112_v2  ;;  %v5185_v2 = vld [vmem:[#allocation12 + $0x190] ss:$8 sps:$4 sm:$0xff]  }
 0xff9   :  { %4718 = vmatmul.mubr.msk.bf16.vlgmr.msra.gmra.mrb[36].mxu0 %vm609_vm4, %v5109_v41  ;;  %v5188_v41 = vld [vmem:[#allocation12 + $0x1a0] ss:$8 sps:$4 sm:$0xff]  }
 0xffa   :  { %3858 = vmatpush1.bf16.msra.mxu0 %v5110_v44  ;;  %v5193_v44 = vld [vmem:[#allocation12 + $0x1b4] ss:$8 sps:$4 sm:$0xff]  }
 0xffb   :  { %3859 = vmatprep.subr.bf16.mxu0 %v5115_v61  ;;  %v5191_v61 = vld [vmem:[#allocation12 + $0x1b0] ss:$8 sps:$4 sm:$0xff]  }
 0xffe   :  { %3860 = vmatpush1.bf16.msra.mxu0 %v5113_v18  ;;  %v5196_v18 = vld [vmem:[#allocation12 + $0x1c4] ss:$8 sps:$4 sm:$0xff]  }
 0xfff   :  { %3861 = vmatprep.subr.bf16.mxu0 %v5118_v48  ;;  %v5194_v48 = vld [vmem:[#allocation12 + $0x1c0] ss:$8 sps:$4 sm:$0xff]  }
0x1002   :  { %3862 = vmatpush1.bf16.msra.mxu0 %v5116_v51  ;;  %v5199_v51 = vld [vmem:[#allocation12 + $0x1d4] ss:$8 sps:$4 sm:$0xff]  }
0x1003   :  { %3863 = vmatprep.subr.bf16.mxu0 %v5121_v5  ;;  %v5197_v5 = vld [vmem:[#allocation12 + $0x1d0] ss:$8 sps:$4 sm:$0xff]  }
0x1006   :  { %3864 = vmatpush1.bf16.msra.mxu0 %v5119_v54  ;;  %v5202_v54 = vld [vmem:[#allocation12 + $0x1e4] ss:$8 sps:$4 sm:$0xff]  }
0x1007   :  { %3865 = vmatprep.subr.bf16.mxu0 %v5124_v6  ;;  %v5200_v6 = vld [vmem:[#allocation12 + $0x1e0] ss:$8 sps:$4 sm:$0xff]  }
0x100a   :  { %3866 = vmatpush1.bf16.msra.mxu0 %v5122_v7  ;;  %v5205_v7 = vld [vmem:[#allocation12 + $0x1f4] ss:$8 sps:$4 sm:$0xff]  }
0x100b   :  { %3867 = vmatprep.subr.bf16.mxu0 %v5127_v8  ;;  %v5203_v8 = vld [vmem:[#allocation12 + $0x1f0] ss:$8 sps:$4 sm:$0xff]  }
0x100e   :  { %3868 = vmatpush1.bf16.msra.mxu0 %v5125_v57  ;;  %v5208_v57 = vld [vmem:[#allocation12 + $0x204] ss:$8 sps:$4 sm:$0xff]  }
0x100f   :  { %3869 = vmatprep.subr.bf16.mxu0 %v5130_v9  ;;  %v5206_v9 = vld [vmem:[#allocation12 + $0x200] ss:$8 sps:$4 sm:$0xff]  }
0x1012   :  { %3870 = vmatpush1.bf16.msra.mxu0 %v5128_v10  ;;  %v3276_v10 = vrot.slane %v6587_v11, 4 }
0x1013   :  { %3871 = vmatprep.subr.bf16.mxu0 %v5133_v12  ;;  %v5211_v12 = vld [vmem:[#allocation12 + $0x214] ss:$8 sps:$4 sm:$0xff]  }
0x1016   :  { %3872 = vmatpush1.bf16.msra.mxu0 %v5131_v60 }
0x1017   :  { %3873 = vmatprep.subr.bf16.mxu0 %v5136_v63  ;;  %v5209_v63 = vld [vmem:[#allocation12 + $0x210] ss:$8 sps:$4 sm:$0xff]  }
0x101a   :  { %3874 = vmatpush1.bf16.msra.mxu0 %v5134_v13  ;;  %v5214_v13 = vld [vmem:[#allocation12 + $0x224] ss:$8 sps:$4 sm:$0xff]  }
0x101b   :  { %3875 = vmatprep.subr.bf16.mxu0 %v5139_v14  ;;  %v5212_v14 = vld [vmem:[#allocation12 + $0x220] ss:$8 sps:$4 sm:$0xff]  }
0x101e   :  { %3876 = vmatpush1.bf16.msra.mxu0 %v5137_v15  ;;  %v5217_v15 = vld [vmem:[#allocation12 + $0x234] ss:$8 sps:$4 sm:$0xff]  }
0x101f   :  { %3877 = vmatprep.subr.bf16.mxu0 %v5142_v16  ;;  %v5215_v16 = vld [vmem:[#allocation12 + $0x230] ss:$8 sps:$4 sm:$0xff]  }
0x1022   :  { %3878 = vmatpush1.bf16.msra.mxu0 %v5140_v1  ;;  %v5220_v1 = vld [vmem:[#allocation12 + $0x244] ss:$8 sps:$4 sm:$0xff]  }
0x1023   :  { %3879 = vmatprep.subr.bf16.mxu0 %v5145_v17  ;;  %v5218_v17 = vld [vmem:[#allocation12 + $0x240] ss:$8 sps:$4 sm:$0xff]  }
0x1026   :  { %3880 = vmatpush1.bf16.msra.mxu0 %v5143_v19  ;;  %v5223_v19 = vld [vmem:[#allocation12 + $0x254] ss:$8 sps:$4 sm:$0xff]  }
0x1027   :  { %3881 = vmatprep.subr.bf16.mxu0 %v5148_v30  ;;  %v5221_v30 = vld [vmem:[#allocation12 + $0x250] ss:$8 sps:$4 sm:$0xff]  }
0x102a   :  { %3882 = vmatpush1.bf16.msra.mxu0 %v5146_v21  ;;  %v5226_v21 = vld [vmem:[#allocation12 + $0x264] ss:$8 sps:$4 sm:$0xff]  }
0x102b   :  { %3883 = vmatprep.subr.bf16.mxu0 %v5151_v22  ;;  %v5224_v22 = vld [vmem:[#allocation12 + $0x260] ss:$8 sps:$4 sm:$0xff]  }
0x102e   :  { %3884 = vmatpush1.bf16.msra.mxu0 %v5149_v23  ;;  %v5229_v23 = vld [vmem:[#allocation12 + $0x274] ss:$8 sps:$4 sm:$0xff]  }
0x102f   :  { %3885 = vmatprep.subr.bf16.mxu0 %v5154_v31  ;;  %v5227_v31 = vld [vmem:[#allocation12 + $0x270] ss:$8 sps:$4 sm:$0xff]  }
0x1032   :  { %3886 = vmatpush1.bf16.msra.mxu0 %v5152_v25  ;;  %v5232_v25 = vld [vmem:[#allocation12 + $0x284] ss:$8 sps:$4 sm:$0xff]  }
0x1033   :  { %3887 = vmatprep.subr.bf16.mxu0 %v5157_v4  ;;  %v5236_v4 = vld [vmem:[#allocation12 + $0x2a0] ss:$8 sps:$4 sm:$0xff]  }
0x1036   :  { %3888 = vmatpush1.bf16.msra.mxu0 %v5155_v32  ;;  %v5241_v32 = vld [vmem:[#allocation12 + $0x2b4] ss:$8 sps:$4 sm:$0xff]  }
0x1037   :  { %3898 = vmatprep.subr.bf16.mxu0 %v5160_v33  ;;  %v5239_v33 = vld [vmem:[#allocation12 + $0x2b0] ss:$8 sps:$4 sm:$0xff]  }
0x10cc   :  { %v6589_v34 = vpop.f32.mrb[36].mxu0 }
0x10cd   :  { %v3259_v24 = vpop.f32.mrb[37].mxu0  ;;  %v3274_v60 = vpack.c.bf16 %v6589_v34, %v6589_v34  ;;  %v5244_v34 = vld [vmem:[#allocation12 + $0x2c4] ss:$8 sps:$4 sm:$0xff]  }
0x10ce   :  { %v4720_v35 = vpop.f32.mrb[38].mxu0 }
0x10cf   :  { %v3262_v36 = vpop.f32.mrb[39].mxu0  ;;  %v5247_v35 = vld [vmem:[#allocation12 + $0x2d4] ss:$8 sps:$4 sm:$0xff]  }
0x10d0   :  { %v3273_v37 = vpack.c.bf16 %v3262_v36, %v3259_v24  ;;  %v5242_v24 = vld [vmem:[#allocation12 + $0x2c0] ss:$8 sps:$4 sm:$0xff]   ;;  %v5245_v36 = vld [vmem:[#allocation12 + $0x2d0] ss:$8 sps:$4 sm:$0xff]  }
0x10d2   :  { %v3279_v40 = vrot.slane %v3273_v37, 4  ;;  %3889 = vmatprep.mubr.bf16.mxu0 %v3273_v37  ;;  %v5250_v37 = vld [vmem:[#allocation12 + $0x2e4] ss:$8 sps:$4 sm:$0xff]  }
0x10d3   :  { %3890 = vmatmul.mubr.bf16.vlgmr.msra.gmra.mrb[40].mxu0 %v6587_v11  ;;  %v5238_v11 = vld [vmem:[#allocation12 + $0x2a4] ss:$8 sps:$4 sm:$0xff]  }
0x10d4   :  { %3899 = vmatpush1.bf16.msra.mxu0 %v5158_v38  ;;  %3930 = vmatprep.mubr.bf16.mxu0 %v3279_v40  ;;  %v5248_v38 = vld [vmem:[#allocation12 + $0x2e0] ss:$8 sps:$4 sm:$0xff]   ;;  %v5251_v40 = vld [vmem:[#allocation12 + $0x2f0] ss:$8 sps:$4 sm:$0xff]  }
0x10d5   :  { %3900 = vmatprep.subr.bf16.mxu0 %v5163_v39  ;;  %v5253_v39 = vld [vmem:[#allocation12 + $0x2f4] ss:$8 sps:$4 sm:$0xff]  }
0x10d8   :  { %3901 = vmatpush1.bf16.msra.mxu0 %v5161_v45  ;;  %v3203_v45 = vpack.c.bf16 %v6585_v26, %v6585_v26 }
0x10d9   :  { %3902 = vmatprep.subr.bf16.mxu0 %v5166_v42 }
0x10dc   :  { %3903 = vmatpush1.bf16.msra.mxu0 %v5164_v43 }
0x10dd   :  { %3904 = vmatprep.subr.bf16.mxu0 %v5169_v46 }
0x10e0   :  { %3905 = vmatpush1.bf16.msra.mxu0 %v5167_v49 }
0x10e1   :  { %3906 = vmatprep.subr.bf16.mxu0 %v5172_v50 }
0x10e4   :  { %3907 = vmatpush1.bf16.msra.mxu0 %v5170_v47 }
0x10e5   :  { %3908 = vmatprep.subr.bf16.mxu0 %v5175_v52 }
0x10e8   :  { %3909 = vmatpush1.bf16.msra.mxu0 %v5173_v53 }
0x10e9   :  { %3910 = vmatprep.subr.bf16.mxu0 %v5178_v55 }
0x10ec   :  { %3911 = vmatpush1.bf16.msra.mxu0 %v5176_v56 }
0x10ed   :  { %3912 = vmatprep.subr.bf16.mxu0 %v5181_v58 }
0x10f0   :  { %3913 = vmatpush1.bf16.msra.mxu0 %v5179_v59  ;;  %v4338_v59 = vld [vmem:[#allocation13] ss:$0 sm:$0xff] }
0x10f1   :  { %3914 = vmatprep.subr.bf16.mxu0 %v5184_v62 }
0x10f4   :  { %3915 = vmatpush1.bf16.msra.mxu0 %v5182_v20 }
0x10f5   :  { %3916 = vmatprep.subr.bf16.mxu0 %v5187_v0 }
0x10f8   :  { %3917 = vmatpush1.bf16.msra.mxu0 %v5185_v2 }
0x10f9   :  { %3918 = vmatprep.subr.bf16.mxu0 %v5190_v3 }
0x10fc   :  { %3919 = vmatpush1.bf16.msra.mxu0 %v5188_v41 }
0x10fd   :  { %3920 = vmatprep.subr.bf16.mxu0 %v5193_v44 }
0x1100   :  { %3921 = vmatpush1.bf16.msra.mxu0 %v5191_v61 }
0x1101   :  { %3922 = vmatprep.subr.bf16.mxu0 %v5196_v18 }
0x1104   :  { %3923 = vmatpush1.bf16.msra.mxu0 %v5194_v48 }
0x1105   :  { %3924 = vmatprep.subr.bf16.mxu0 %v5199_v51 }
0x1108   :  { %3925 = vmatpush1.bf16.msra.mxu0 %v5197_v5 }
0x1109   :  { %3926 = vmatprep.subr.bf16.mxu0 %v5202_v54 }
0x110c   :  { %3927 = vmatpush1.bf16.msra.mxu0 %v5200_v6 }
0x110d   :  { %3928 = vmatprep.subr.bf16.mxu0 %v5205_v7 }
0x1110   :  { %3929 = vmatpush1.bf16.msra.mxu0 %v5203_v8 }
0x1111   :  { %3939 = vmatprep.subr.bf16.mxu0 %v5208_v57 }
0x1113   :  { %3931 = vmatmul.mubr.bf16.vlgmr.msra.gmra.mrb[44].mxu0 %v3276_v10 }
0x1114   :  { %3940 = vmatpush1.bf16.msra.mxu0 %v5206_v9  ;;  %3971 = vmatprep.mubr.bf16.mxu0 %v3274_v60 }
0x1115   :  { %3941 = vmatprep.subr.bf16.mxu0 %v5211_v12 }
0x1118   :  { %3942 = vmatpush1.bf16.msra.mxu0 %v5209_v63 }
0x1119   :  { %3943 = vmatprep.subr.bf16.mxu0 %v5214_v13 }
0x111c   :  { %3944 = vmatpush1.bf16.msra.mxu0 %v5212_v14 }
0x111d   :  { %3945 = vmatprep.subr.bf16.mxu0 %v5217_v15 }
0x1120   :  { %3946 = vmatpush1.bf16.msra.mxu0 %v5215_v16 }
0x1121   :  { %3947 = vmatprep.subr.bf16.mxu0 %v5220_v1 }
0x1124   :  { %3948 = vmatpush1.bf16.msra.mxu0 %v5218_v17 }
0x1125   :  { %3949 = vmatprep.subr.bf16.mxu0 %v5223_v19 }
0x1128   :  { %3950 = vmatpush1.bf16.msra.mxu0 %v5221_v30 }
0x1129   :  { %3951 = vmatprep.subr.bf16.mxu0 %v5226_v21 }
0x112c   :  { %3952 = vmatpush1.bf16.msra.mxu0 %v5224_v22 }
0x112d   :  { %3953 = vmatprep.subr.bf16.mxu0 %v5229_v23 }
0x1130   :  { %3954 = vmatpush1.bf16.msra.mxu0 %v5227_v31 }
0x1131   :  { %3955 = vmatprep.subr.bf16.mxu0 %v5232_v25 }
0x1134   :  { %3956 = vmatpush1.bf16.msra.mxu0 %v5230_v27 }
0x1135   :  { %3957 = vmatprep.subr.bf16.mxu0 %v5235_v28 }
0x1138   :  { %3958 = vmatpush1.bf16.msra.mxu0 %v5233_v29 }
0x1139   :  { %3959 = vmatprep.subr.bf16.mxu0 %v5238_v11 }
0x113c   :  { %3960 = vmatpush1.bf16.msra.mxu0 %v5236_v4 }
0x113d   :  { %3961 = vmatprep.subr.bf16.mxu0 %v5241_v32 }
0x1140   :  { %3962 = vmatpush1.bf16.msra.mxu0 %v5239_v33 }
0x1141   :  { %3963 = vmatprep.subr.bf16.mxu0 %v5244_v34 }
0x1144   :  { %3964 = vmatpush1.bf16.msra.mxu0 %v5242_v24 }
0x1145   :  { %3965 = vmatprep.subr.bf16.mxu0 %v5247_v35 }
0x1148   :  { %3966 = vmatpush1.bf16.msra.mxu0 %v5245_v36 }
0x1149   :  { %3967 = vmatprep.subr.bf16.mxu0 %v5250_v37 }
0x114c   :  { %3968 = vmatpush1.bf16.msra.mxu0 %v5248_v38 }
0x114d   :  { %3969 = vmatprep.subr.bf16.mxu0 %v5253_v39 }
0x1150   :  { %3970 = vmatpush1.bf16.msra.mxu0 %v5251_v40 }
0x1153   :  { %3972 = vmatmul.mubr.bf16.vlgmr.msra.gmra.mrb[48].mxu0 %v3203_v45 }
0x11a6   :  { %v3891_v42 = vpop.f32.mrb[40].mxu0 }
0x11a7   :  { %v3893_v43 = vpop.f32.mrb[41].mxu0 }
0x11a8   :  { %v3895_v46 = vpop.f32.mrb[42].mxu0 }
0x11a9   :  { %v3896_v49 = vpop.f32.mrb[43].mxu0 }
0x11e6   :  { %v3932_v50 = vpop.f32.mrb[44].mxu0 }
0x11e7   :  { %v3933_v47 = vadd.f32 %v3932_v50, %v3891_v42  ;;  %v3934_v52 = vpop.f32.mrb[45].mxu0 }
0x11e8   :  { %v3935_v53 = vadd.f32 %v3934_v52, %v3893_v43  ;;  %v3936_v55 = vpop.f32.mrb[46].mxu0 }
0x11e9   :  { %v3937_v56 = vpop.f32.mrb[47].mxu0 }
0x1226   :  { %v3973_v58 = vpop.f32.mrb[48].mxu0 }
0x1227   :  { %v3974_v62 = vadd.f32 %v3973_v58, %v3933_v47  ;;  %v3975_v20 = vpop.f32.mrb[49].mxu0 }
0x1228   :  { %v3976_v0 = vadd.f32 %v3975_v20, %v3935_v53  ;;  %v3977_v2 = vpop.f32.mrb[50].mxu0 }
0x1229   :  { %v3987_v3 = vadd.f32 %v4338_v59, %v3974_v62  ;;  %v3978_v41 = vpop.f32.mrb[51].mxu0 }
0x122a   :  { %v3988_v26 = vadd.f32 %v4338_v59, %v3976_v0 }
0x122b   :  { %5260 = vtanh.f32 %v3987_v3 }
0x122c   :  { %5262 = vtanh.f32 %v3988_v26 }
0x1235   :  { %v5261_v44 = vpop.eup %5260 }
0x1236   :  { %v5263_v61 = vpop.eup %5262  ;;  %3991 = vst [vmem:[%s6629_s26] sm:$0xff] %v5261_v44 }
0x1237   :  { %3992 = vst [vmem:[%s6629_s26 + $0x8] sm:$0xff] %v5263_v61 }
0x1238   :  { %3997 = vsyncpa [#allocation3], 1 }
0x1239   :  { %3998 = vsyncpa [#allocation5], 1 }
0x123a   :  { %3999 = vsyncpa [#allocation8], 1 }
0x123b   :  { %4000 = vsyncpa [#allocation11], 1 }
0x123c   :  { %4001 = vsyncpa [#allocation14], 1 }

</bundles_post_ra>
